<compile_context>
chip_gen: v7x
topology: tpu7x:2x2x1
jax: 0.10.0
libtpu: 0.0.40
codegen_flags: <defaults>
</compile_context>

<pallas_src>
import numpy as np

import jax
import jax.numpy as jnp
from jax.experimental import pallas as pl
from jax.experimental.pallas import tpu as pltpu


# ----------------------------------------------------------------------------
# Fixed LeNet geometry (32x32 single-channel input, implied by fc1 = 16*5*5)
# ----------------------------------------------------------------------------
_K = 5
_H1 = _W1 = 32                    # conv1 input spatial
_C1P = 8                          # conv1 out channels padded 6 -> 8
_HO1 = _WO1 = _H1 - _K + 1        # 28
_HP1 = _WP1 = _HO1 // 2           # 14
_L1 = _WP1 * _C1P                 # 112 packed (w, c) lanes feeding conv2
_C2P = 16                         # conv2 out channels (already 16)
_HO2 = _WO2 = _HP1 - _K + 1       # 10
_HP2 = _WP2 = _HO2 // 2           # 5
_L2 = _WP2 * _C2P                 # 80
_FEAT = _HP2 * _L2                # 400 flattened features (h, w, c order)
_FEAT_PAD = 512                   # fc1 K padded to a lane multiple
_NPAD = 128                       # padded hidden / logit lane width


# ----------------------------------------------------------------------------
# Fused Pallas kernel: bt images per grid step, whole network per step
# ----------------------------------------------------------------------------
def _lenet_kernel(x_ref, cw1_ref, cb1_ref, sc1_ref, sr1_ref,
                  cw2_ref, cb2_ref, sc2_ref,
                  fw1_ref, fb1_ref, fw2_ref, fb2_ref, fw3_ref, fb3_ref,
                  o_ref,
                  lhs1_ref, lhs2_ref, feat_ref):
    """x_ref: (bt, 32, 32) f32 images -> o_ref: (bt, 128) f32 padded logits."""
    bt = x_ref.shape[0]
    f32, bf16 = jnp.float32, jnp.bfloat16

    # ---- conv1: im2row over kernel rows into a batch-stacked LHS -------------
    # lhs1[b*28 + i, ki*32 + w] = x[b, i + ki, w]  -> ONE (bt*28, 160) MXU matmul
    xb = x_ref[...].astype(bf16)                                    # (bt, 32, 32)
    for b in range(bt):
        for ki in range(_K):
            lhs1_ref[b * _HO1:(b + 1) * _HO1, ki * _W1:(ki + 1) * _W1] = \
                xb[b, ki:ki + _HO1, :]
    c1 = jnp.dot(lhs1_ref[...], cw1_ref[...], preferred_element_type=f32)
    c1 = jnp.maximum(c1 + cb1_ref[...], 0.0)                        # (bt*28, 224) f32
    # TODO(synk): training-mode Dropout2d masking not implemented (identity at inference).
    c1 = c1.astype(bf16)

    # 2x2/2 max-pool along W: two 0/1 column-selection matmuls (exact in bf16) + max
    wp1 = jnp.maximum(
        jnp.dot(c1, sc1_ref[0], preferred_element_type=f32),
        jnp.dot(c1, sc1_ref[1], preferred_element_type=f32)).astype(bf16)  # (bt*28, 112)

    # ---- per image: pool along H, scatter row-shifted slices into conv2 LHS ---
    # lhs2[b*10 + i, ki*112 + l] = pooled1[b, i + ki, l]
    sr0 = sr1_ref[0]
    sr1 = sr1_ref[1]
    for b in range(bt):
        w_img = wp1[b * _HO1:(b + 1) * _HO1, :]                     # (28, 112) bf16
        p1 = jnp.maximum(
            jnp.dot(sr0, w_img, preferred_element_type=f32),
            jnp.dot(sr1, w_img, preferred_element_type=f32)).astype(bf16)  # (14, 112)
        for ki in range(_K):
            lhs2_ref[b * _HO2:(b + 1) * _HO2, ki * _L1:(ki + 1) * _L1] = \
                p1[ki:ki + _HO2, :]

    # ---- conv2: single (bt*10, 560) x (560, 160) MXU matmul -------------------
    c2 = jnp.dot(lhs2_ref[...], cw2_ref[...], preferred_element_type=f32)
    c2 = jnp.maximum(c2 + cb2_ref[...], 0.0)                        # (bt*10, 160) f32
    c2 = c2.astype(bf16)
    wp2 = jnp.maximum(
        jnp.dot(c2, sc2_ref[0], preferred_element_type=f32),
        jnp.dot(c2, sc2_ref[1], preferred_element_type=f32))        # (bt*10, 80) f32

    # ---- pool along H via row-pair max (VPU) + (h, w, c) flatten into features ---
    feat_ref[:, _FEAT:] = jnp.zeros((bt, _FEAT_PAD - _FEAT), bf16)  # zero the K pad
    for b in range(bt):
        for r in range(_HP2):
            top = wp2[b * _HO2 + 2 * r:b * _HO2 + 2 * r + 1, :]
            bot = wp2[b * _HO2 + 2 * r + 1:b * _HO2 + 2 * r + 2, :]
            feat_ref[b:b + 1, r * _L2:(r + 1) * _L2] = \
                jnp.maximum(top, bot).astype(bf16)

    # ---- fc1 -> relu -> fc2 -> relu -> fc3; intermediates never leave VMEM ----
    h = jnp.dot(feat_ref[...], fw1_ref[...], preferred_element_type=f32) + fb1_ref[...]
    h = jnp.maximum(h, 0.0).astype(bf16)
    # TODO(synk): training-mode Dropout masking not implemented (identity at inference).
    h = jnp.dot(h, fw2_ref[...], preferred_element_type=f32) + fb2_ref[...]
    h = jnp.maximum(h, 0.0).astype(bf16)
    h = jnp.dot(h, fw3_ref[...], preferred_element_type=f32) + fb3_ref[...]
    o_ref[...] = h.astype(o_ref.dtype)


# ----------------------------------------------------------------------------
# pallas_call wrapper
# ----------------------------------------------------------------------------
def _pick_block_batch(B, target=16):
    """Images per grid step: must divide B and (to keep the 2-D output BlockSpec
    legal) be a multiple of 8 or equal to the whole batch.  Prefer tiles <= target
    with >= 2 grid steps so v7x's two TensorCores both get work."""
    divisors = [d for d in range(1, B + 1) if B % d == 0]
    legal = [d for d in divisors if d % 8 == 0 or d == B]
    pref = [d for d in legal if d <= target and B // d >= 2]
    if pref:
        return max(pref)
    small = [d for d in legal if d <= max(target, 8)]
    if small:
        return max(small)
    return min(legal)


def _lenet_pallas(x, kp, block_batch):
    """x: (B, 32, 32) f32 -> (B, 128) f32 padded logits (one fused kernel)."""
    B = x.shape[0]
    bt = _pick_block_batch(B, block_batch)

    def resident(a):
        n = a.ndim
        return pl.BlockSpec(a.shape, lambda i, _n=n: (0,) * _n)

    args = (x, kp["conv1_wb"], kp["conv1_brow"], kp["conv1_scol"], kp["conv1_srow"],
            kp["conv2_wb"], kp["conv2_brow"], kp["conv2_scol"],
            kp["fc1_w"], kp["fc1_b"], kp["fc2_w"], kp["fc2_b"],
            kp["fc3_w"], kp["fc3_b"])
    in_specs = [pl.BlockSpec((bt, _H1, _W1), lambda i: (i, 0, 0))] + \
               [resident(a) for a in args[1:]]

    return pl.pallas_call(
        _lenet_kernel,
        out_shape=jax.ShapeDtypeStruct((B, _NPAD), jnp.float32),
        grid=(B // bt,),
        in_specs=in_specs,
        out_specs=pl.BlockSpec((bt, _NPAD), lambda i: (i, 0)),
        scratch_shapes=[
            pltpu.VMEM((bt * _HO1, _K * _W1), jnp.bfloat16),   # conv1 im2row LHS
            pltpu.VMEM((bt * _HO2, _K * _L1), jnp.bfloat16),   # conv2 im2row LHS
            pltpu.VMEM((bt, _FEAT_PAD), jnp.bfloat16),         # flattened FC features
        ],
        compiler_params=pltpu.CompilerParams(
            dimension_semantics=("parallel",),                  # batch-tile axis
            vmem_limit_bytes=32 * 1024 * 1024,
        ),
    )(*args)


# ----------------------------------------------------------------------------
# Host-side (one-time) parameter preparation
# ----------------------------------------------------------------------------
def _banded_conv_weight(w, cin_p, cout_p, W):
    """PyTorch conv weight (Cout, Cin, k, k) -> stacked banded matrix
    (k * W * cin_p, Wo * cout_p) acting on k row-shifted packed image rows."""
    w = np.asarray(w, np.float32)
    cout, cin, k, _ = w.shape
    Wo = W - k + 1
    wb = np.zeros((k, W * cin_p, Wo * cout_p), np.float32)
    for ki in range(k):
        for kj in range(k):
            blk = w[:, :, ki, kj].T                              # (cin, cout)
            for j in range(Wo):
                r0 = (j + kj) * cin_p
                c0 = j * cout_p
                wb[ki, r0:r0 + cin, c0:c0 + cout] = blk
    return wb.reshape(k * W * cin_p, Wo * cout_p)


def _conv_bias_row(b, cout_p, Wo):
    b = np.asarray(b, np.float32)
    bp = np.zeros((cout_p,), np.float32)
    bp[:b.shape[0]] = b
    return np.tile(bp, Wo)[None, :]                              # (1, Wo*cout_p)


def _wpool_selectors(Wo, cout_p):
    """0/1 column-selection matrices turning the W half of 2x2/2 max-pool into
    two matmuls + an elementwise max (exact in bf16)."""
    Wp = Wo // 2
    s = np.zeros((2, Wo * cout_p, Wp * cout_p), np.float32)
    eye = np.eye(cout_p, dtype=np.float32)
    for par in range(2):
        for q in range(Wp):
            s[par, (2 * q + par) * cout_p:(2 * q + par + 1) * cout_p,
              q * cout_p:(q + 1) * cout_p] = eye
    return s


def _hpool_selectors(Ho):
    """0/1 row-selection matrices for the per-image H half of the conv1 pool."""
    Hp = Ho // 2
    s = np.zeros((2, Hp, Ho), np.float32)
    for par in range(2):
        s[par, np.arange(Hp), 2 * np.arange(Hp) + par] = 1.0
    return s


def _pad2(a, rows, cols):
    out = np.zeros((rows, cols), np.float32)
    out[:a.shape[0], :a.shape[1]] = a
    return out


def init_params(key):
    """Parameters in PyTorch layouts (same shapes as the nn.Module)."""
    ks = jax.random.split(key, 10)

    def winit(k, shape, fan_in):
        return jax.random.normal(k, shape, jnp.float32) / np.sqrt(float(fan_in))

    return {
        "conv1_w": winit(ks[0], (6, 1, 5, 5), 25),
        "conv1_b": winit(ks[1], (6,), 25),
        "conv2_w": winit(ks[2], (16, 6, 5, 5), 150),
        "conv2_b": winit(ks[3], (16,), 150),
        "fc1_w": winit(ks[4], (120, 400), 400),   # PyTorch (out, in); in = (c, h, w) flatten
        "fc1_b": winit(ks[5], (120,), 400),
        "fc2_w": winit(ks[6], (84, 120), 120),
        "fc2_b": winit(ks[7], (84,), 120),
        "fc3_w": winit(ks[8], (10, 84), 84),
        "fc3_b": winit(ks[9], (10,), 84),
    }


def prepare_params(p):
    """One-time conversion of PyTorch-layout params to kernel-friendly layouts."""
    # conv1: 1x32x32 -> 6x28x28 -> pool -> (14, 14*8)
    wb1 = _banded_conv_weight(p["conv1_w"], cin_p=1, cout_p=_C1P, W=_W1)     # (160, 224)
    br1 = _conv_bias_row(p["conv1_b"], _C1P, Wo=_WO1)                        # (1, 224)
    sc1 = _wpool_selectors(_WO1, _C1P)                                       # (2, 224, 112)
    sr1 = _hpool_selectors(_HO1)                                             # (2, 14, 28)
    # conv2: 6(->8)x14x14 -> 16x10x10 -> pool -> (5, 5*16)
    wb2 = _banded_conv_weight(p["conv2_w"], cin_p=_C1P, cout_p=_C2P, W=_WP1)  # (560, 160)
    br2 = _conv_bias_row(p["conv2_b"], _C2P, Wo=_WO2)                        # (1, 160)
    sc2 = _wpool_selectors(_WO2, _C2P)                                       # (2, 160, 80)

    # fc1: permute PyTorch (c, h, w) flatten order -> this kernel's (h, w, c) order,
    # transpose to (in, out), pad K 400 -> 512 and N 120 -> 128 (lane-dense).
    w1 = np.asarray(p["fc1_w"], np.float32).reshape(120, 16, 5, 5)
    w1 = w1.transpose(0, 2, 3, 1).reshape(120, 400).T                        # (400, 120)
    w1 = _pad2(w1, _FEAT_PAD, _NPAD)
    b1 = _pad2(np.asarray(p["fc1_b"], np.float32)[None, :], 1, _NPAD)
    w2 = _pad2(np.asarray(p["fc2_w"], np.float32).T, _NPAD, _NPAD)
    b2 = _pad2(np.asarray(p["fc2_b"], np.float32)[None, :], 1, _NPAD)
    w3 = _pad2(np.asarray(p["fc3_w"], np.float32).T, _NPAD, _NPAD)
    b3 = _pad2(np.asarray(p["fc3_b"], np.float32)[None, :], 1, _NPAD)

    bf16, f32 = jnp.bfloat16, jnp.float32
    return {
        "conv1_wb": jnp.asarray(wb1, bf16), "conv1_brow": jnp.asarray(br1, f32),
        "conv1_scol": jnp.asarray(sc1, bf16), "conv1_srow": jnp.asarray(sr1, bf16),
        "conv2_wb": jnp.asarray(wb2, bf16), "conv2_brow": jnp.asarray(br2, f32),
        "conv2_scol": jnp.asarray(sc2, bf16),
        "fc1_w": jnp.asarray(w1, bf16), "fc1_b": jnp.asarray(b1, f32),
        "fc2_w": jnp.asarray(w2, bf16), "fc2_b": jnp.asarray(b2, f32),
        "fc3_w": jnp.asarray(w3, bf16), "fc3_b": jnp.asarray(b3, f32),
    }


# ----------------------------------------------------------------------------
# Forward pass
# ----------------------------------------------------------------------------
def net_forward(x, kp, *, block_batch=16):
    """x: (B, 1, 32, 32) NCHW float32 -> (B, 10) logits."""
    B = x.shape[0]
    assert x.shape[1:] == (1, 32, 32), x.shape
    # Cin == 1, so the packed channel-last 2D-per-image layout is just a squeeze.
    h = x.reshape(B, _H1, _W1)
    logits = _lenet_pallas(h, kp, block_batch)    # (B, 128) lane-dense padded logits
    return logits[:, :10]                          # strip lane padding once


if __name__ == "__main__":
    key = jax.random.PRNGKey(0)
    pkey, xkey = jax.random.split(key)
    params = init_params(pkey)
    kparams = prepare_params(params)
    # fc1 expects 16*5*5 features -> input must be (B, 1, 32, 32), 1 channel.
    x = jax.random.normal(xkey, (2, 1, 32, 32), jnp.float32)
    fwd = jax.jit(net_forward)
    out = fwd(x, kparams)
    jax.block_until_ready(out)
    assert out.shape == (2, 10), out.shape
    assert out.dtype == jnp.float32
    assert bool(jnp.all(jnp.isfinite(out)))
    print("KERNEL_OK")
</pallas_src>

<mosaic_0001>
module attributes {stable_mosaic.version = 11 : i64} {
  func.func @_lenet_kernel(%arg0: i32, %arg1: memref<2x32x32xf32, #tpu.memory_space<vmem>>, %arg2: memref<160x224xbf16, #tpu.memory_space<vmem>>, %arg3: memref<1x224xf32, #tpu.memory_space<vmem>>, %arg4: memref<2x224x112xbf16, #tpu.memory_space<vmem>>, %arg5: memref<2x14x28xbf16, #tpu.memory_space<vmem>>, %arg6: memref<560x160xbf16, #tpu.memory_space<vmem>>, %arg7: memref<1x160xf32, #tpu.memory_space<vmem>>, %arg8: memref<2x160x80xbf16, #tpu.memory_space<vmem>>, %arg9: memref<512x128xbf16, #tpu.memory_space<vmem>>, %arg10: memref<1x128xf32, #tpu.memory_space<vmem>>, %arg11: memref<128x128xbf16, #tpu.memory_space<vmem>>, %arg12: memref<1x128xf32, #tpu.memory_space<vmem>>, %arg13: memref<128x128xbf16, #tpu.memory_space<vmem>>, %arg14: memref<1x128xf32, #tpu.memory_space<vmem>>, %arg15: memref<2x128xf32, #tpu.memory_space<vmem>>, %arg16: memref<56x160xbf16, #tpu.memory_space<vmem>>, %arg17: memref<20x560xbf16, #tpu.memory_space<vmem>>, %arg18: memref<2x512xbf16, #tpu.memory_space<vmem>>) attributes {dimension_semantics = [#tpu.dimension_semantics<parallel>], iteration_bounds = array<i64: 1>, scalar_prefetch = 0 : i64, scratch_operands = 3 : i64, tpu.core_type = #tpu.core_type<tc>, window_params = [{transform_indices = @transform_0, window_bounds = array<i64: 2, 32, 32>}, {pipeline_mode = #tpu.pipeline_mode<synchronous>, transform_indices = @transform_1, window_bounds = array<i64: 160, 224>}, {pipeline_mode = #tpu.pipeline_mode<synchronous>, transform_indices = @transform_2, window_bounds = array<i64: 1, 224>}, {pipeline_mode = #tpu.pipeline_mode<synchronous>, transform_indices = @transform_3, window_bounds = array<i64: 2, 224, 112>}, {pipeline_mode = #tpu.pipeline_mode<synchronous>, transform_indices = @transform_4, window_bounds = array<i64: 2, 14, 28>}, {pipeline_mode = #tpu.pipeline_mode<synchronous>, transform_indices = @transform_5, window_bounds = array<i64: 560, 160>}, {pipeline_mode = #tpu.pipeline_mode<synchronous>, transform_indices = @transform_6, window_bounds = array<i64: 1, 160>}, {pipeline_mode = #tpu.pipeline_mode<synchronous>, transform_indices = @transform_7, window_bounds = array<i64: 2, 160, 80>}, {pipeline_mode = #tpu.pipeline_mode<synchronous>, transform_indices = @transform_8, window_bounds = array<i64: 512, 128>}, {pipeline_mode = #tpu.pipeline_mode<synchronous>, transform_indices = @transform_9, window_bounds = array<i64: 1, 128>}, {pipeline_mode = #tpu.pipeline_mode<synchronous>, transform_indices = @transform_10, window_bounds = array<i64: 128, 128>}, {pipeline_mode = #tpu.pipeline_mode<synchronous>, transform_indices = @transform_11, window_bounds = array<i64: 1, 128>}, {pipeline_mode = #tpu.pipeline_mode<synchronous>, transform_indices = @transform_12, window_bounds = array<i64: 128, 128>}, {pipeline_mode = #tpu.pipeline_mode<synchronous>, transform_indices = @transform_13, window_bounds = array<i64: 1, 128>}, {transform_indices = @transform_14, window_bounds = array<i64: 2, 128>}]} {
    %c0 = arith.constant 0 : index
    %c0_0 = arith.constant 0 : index
    %c0_1 = arith.constant 0 : index
    %0 = vector.load %arg1[%c0, %c0_0, %c0_1] : memref<2x32x32xf32, #tpu.memory_space<vmem>>, vector<2x32x32xf32>
    %1 = arith.truncf %0 : vector<2x32x32xf32> to vector<2x32x32xbf16>
    %2 = vector.extract_strided_slice %1 {offsets = [0, 0, 0], sizes = [1, 28, 32], strides = [1, 1, 1]} : vector<2x32x32xbf16> to vector<1x28x32xbf16>
    %3 = vector.shape_cast %2 : vector<1x28x32xbf16> to vector<28x32xbf16>
    %c0_2 = arith.constant 0 : index
    %c0_3 = arith.constant 0 : index
    %4 = vector.load %arg16[%c0_2, %c0_3] : memref<56x160xbf16, #tpu.memory_space<vmem>>, vector<28x32xbf16>
    tpu.vector_store %arg16[%c0_2, %c0_3], %3 {strides = array<i32>} : memref<56x160xbf16, #tpu.memory_space<vmem>>, vector<28x32xbf16>,
    %5 = vector.extract_strided_slice %1 {offsets = [0, 1, 0], sizes = [1, 28, 32], strides = [1, 1, 1]} : vector<2x32x32xbf16> to vector<1x28x32xbf16>
    %6 = vector.shape_cast %5 : vector<1x28x32xbf16> to vector<28x32xbf16>
    %c0_4 = arith.constant 0 : index
    %c32 = arith.constant 32 : index
    %7 = vector.load %arg16[%c0_4, %c32] : memref<56x160xbf16, #tpu.memory_space<vmem>>, vector<28x32xbf16>
    tpu.vector_store %arg16[%c0_4, %c32], %6 {strides = array<i32>} : memref<56x160xbf16, #tpu.memory_space<vmem>>, vector<28x32xbf16>,
    %8 = vector.extract_strided_slice %1 {offsets = [0, 2, 0], sizes = [1, 28, 32], strides = [1, 1, 1]} : vector<2x32x32xbf16> to vector<1x28x32xbf16>
    %9 = vector.shape_cast %8 : vector<1x28x32xbf16> to vector<28x32xbf16>
    %c0_5 = arith.constant 0 : index
    %c64 = arith.constant 64 : index
    %10 = vector.load %arg16[%c0_5, %c64] : memref<56x160xbf16, #tpu.memory_space<vmem>>, vector<28x32xbf16>
    tpu.vector_store %arg16[%c0_5, %c64], %9 {strides = array<i32>} : memref<56x160xbf16, #tpu.memory_space<vmem>>, vector<28x32xbf16>,
    %11 = vector.extract_strided_slice %1 {offsets = [0, 3, 0], sizes = [1, 28, 32], strides = [1, 1, 1]} : vector<2x32x32xbf16> to vector<1x28x32xbf16>
    %12 = vector.shape_cast %11 : vector<1x28x32xbf16> to vector<28x32xbf16>
    %c0_6 = arith.constant 0 : index
    %c96 = arith.constant 96 : index
    %13 = vector.load %arg16[%c0_6, %c96] : memref<56x160xbf16, #tpu.memory_space<vmem>>, vector<28x32xbf16>
    tpu.vector_store %arg16[%c0_6, %c96], %12 {strides = array<i32>} : memref<56x160xbf16, #tpu.memory_space<vmem>>, vector<28x32xbf16>,
    %14 = vector.extract_strided_slice %1 {offsets = [0, 4, 0], sizes = [1, 28, 32], strides = [1, 1, 1]} : vector<2x32x32xbf16> to vector<1x28x32xbf16>
    %15 = vector.shape_cast %14 : vector<1x28x32xbf16> to vector<28x32xbf16>
    %c0_7 = arith.constant 0 : index
    %c128 = arith.constant 128 : index
    %16 = vector.load %arg16[%c0_7, %c128] : memref<56x160xbf16, #tpu.memory_space<vmem>>, vector<28x32xbf16>
    tpu.vector_store %arg16[%c0_7, %c128], %15 {strides = array<i32>} : memref<56x160xbf16, #tpu.memory_space<vmem>>, vector<28x32xbf16>,
    %17 = vector.extract_strided_slice %1 {offsets = [1, 0, 0], sizes = [1, 28, 32], strides = [1, 1, 1]} : vector<2x32x32xbf16> to vector<1x28x32xbf16>
    %18 = vector.shape_cast %17 : vector<1x28x32xbf16> to vector<28x32xbf16>
    %c28 = arith.constant 28 : index
    %c0_8 = arith.constant 0 : index
    %19 = vector.load %arg16[%c28, %c0_8] : memref<56x160xbf16, #tpu.memory_space<vmem>>, vector<28x32xbf16>
    tpu.vector_store %arg16[%c28, %c0_8], %18 {strides = array<i32>} : memref<56x160xbf16, #tpu.memory_space<vmem>>, vector<28x32xbf16>,
    %20 = vector.extract_strided_slice %1 {offsets = [1, 1, 0], sizes = [1, 28, 32], strides = [1, 1, 1]} : vector<2x32x32xbf16> to vector<1x28x32xbf16>
    %21 = vector.shape_cast %20 : vector<1x28x32xbf16> to vector<28x32xbf16>
    %c28_9 = arith.constant 28 : index
    %c32_10 = arith.constant 32 : index
    %22 = vector.load %arg16[%c28_9, %c32_10] : memref<56x160xbf16, #tpu.memory_space<vmem>>, vector<28x32xbf16>
    tpu.vector_store %arg16[%c28_9, %c32_10], %21 {strides = array<i32>} : memref<56x160xbf16, #tpu.memory_space<vmem>>, vector<28x32xbf16>,
    %23 = vector.extract_strided_slice %1 {offsets = [1, 2, 0], sizes = [1, 28, 32], strides = [1, 1, 1]} : vector<2x32x32xbf16> to vector<1x28x32xbf16>
    %24 = vector.shape_cast %23 : vector<1x28x32xbf16> to vector<28x32xbf16>
    %c28_11 = arith.constant 28 : index
    %c64_12 = arith.constant 64 : index
    %25 = vector.load %arg16[%c28_11, %c64_12] : memref<56x160xbf16, #tpu.memory_space<vmem>>, vector<28x32xbf16>
    tpu.vector_store %arg16[%c28_11, %c64_12], %24 {strides = array<i32>} : memref<56x160xbf16, #tpu.memory_space<vmem>>, vector<28x32xbf16>,
    %26 = vector.extract_strided_slice %1 {offsets = [1, 3, 0], sizes = [1, 28, 32], strides = [1, 1, 1]} : vector<2x32x32xbf16> to vector<1x28x32xbf16>
    %27 = vector.shape_cast %26 : vector<1x28x32xbf16> to vector<28x32xbf16>
    %c28_13 = arith.constant 28 : index
    %c96_14 = arith.constant 96 : index
    %28 = vector.load %arg16[%c28_13, %c96_14] : memref<56x160xbf16, #tpu.memory_space<vmem>>, vector<28x32xbf16>
    tpu.vector_store %arg16[%c28_13, %c96_14], %27 {strides = array<i32>} : memref<56x160xbf16, #tpu.memory_space<vmem>>, vector<28x32xbf16>,
    %29 = vector.extract_strided_slice %1 {offsets = [1, 4, 0], sizes = [1, 28, 32], strides = [1, 1, 1]} : vector<2x32x32xbf16> to vector<1x28x32xbf16>
    %30 = vector.shape_cast %29 : vector<1x28x32xbf16> to vector<28x32xbf16>
    %c28_15 = arith.constant 28 : index
    %c128_16 = arith.constant 128 : index
    %31 = vector.load %arg16[%c28_15, %c128_16] : memref<56x160xbf16, #tpu.memory_space<vmem>>, vector<28x32xbf16>
    tpu.vector_store %arg16[%c28_15, %c128_16], %30 {strides = array<i32>} : memref<56x160xbf16, #tpu.memory_space<vmem>>, vector<28x32xbf16>,
    %c0_17 = arith.constant 0 : index
    %c0_18 = arith.constant 0 : index
    %32 = vector.load %arg16[%c0_17, %c0_18] : memref<56x160xbf16, #tpu.memory_space<vmem>>, vector<56x160xbf16>
    %c0_19 = arith.constant 0 : index
    %c0_20 = arith.constant 0 : index
    %33 = vector.load %arg2[%c0_19, %c0_20] : memref<160x224xbf16, #tpu.memory_space<vmem>>, vector<160x224xbf16>
    %cst = arith.constant dense<0.000000e+00> : vector<56x224xf32>
    %34 = tpu.matmul %32, %33, %cst {dimension_numbers = #tpu.dot_dimension_numbers<[1], [0], [0], [1], [0, 0, 1, 1], [], []>} : vector<56x160xbf16>, vector<160x224xbf16>, vector<56x224xf32> -> vector<56x224xf32>
    %c0_21 = arith.constant 0 : index
    %c0_22 = arith.constant 0 : index
    %35 = vector.load %arg3[%c0_21, %c0_22] : memref<1x224xf32, #tpu.memory_space<vmem>>, vector<1x224xf32>
    %36 = vector.broadcast %35 : vector<1x224xf32> to vector<56x224xf32>
    %37 = arith.addf %34, %36 : vector<56x224xf32>
    %cst_23 = arith.constant 0.000000e+00 : f32
    %38 = vector.broadcast %cst_23 : f32 to vector<56x224xf32>
    %39 = arith.maximumf %37, %38 : vector<56x224xf32>
    %40 = arith.truncf %39 : vector<56x224xf32> to vector<56x224xbf16>
    %c0_24 = arith.constant 0 : index
    %c0_25 = arith.constant 0 : index
    %c0_26 = arith.constant 0 : index
    %41 = vector.load %arg4[%c0_24, %c0_25, %c0_26] : memref<2x224x112xbf16, #tpu.memory_space<vmem>>, vector<1x224x112xbf16>
    %42 = vector.shape_cast %41 : vector<1x224x112xbf16> to vector<224x112xbf16>
    %cst_27 = arith.constant dense<0.000000e+00> : vector<56x112xf32>
    %43 = tpu.matmul %40, %42, %cst_27 {dimension_numbers = #tpu.dot_dimension_numbers<[1], [0], [0], [1], [0, 0, 1, 1], [], []>} : vector<56x224xbf16>, vector<224x112xbf16>, vector<56x112xf32> -> vector<56x112xf32>
    %c1 = arith.constant 1 : index
    %c0_28 = arith.constant 0 : index
    %c0_29 = arith.constant 0 : index
    %44 = vector.load %arg4[%c1, %c0_28, %c0_29] : memref<2x224x112xbf16, #tpu.memory_space<vmem>>, vector<1x224x112xbf16>
    %45 = vector.shape_cast %44 : vector<1x224x112xbf16> to vector<224x112xbf16>
    %cst_30 = arith.constant dense<0.000000e+00> : vector<56x112xf32>
    %46 = tpu.matmul %40, %45, %cst_30 {dimension_numbers = #tpu.dot_dimension_numbers<[1], [0], [0], [1], [0, 0, 1, 1], [], []>} : vector<56x224xbf16>, vector<224x112xbf16>, vector<56x112xf32> -> vector<56x112xf32>
    %47 = arith.maximumf %43, %46 : vector<56x112xf32>
    %48 = arith.truncf %47 : vector<56x112xf32> to vector<56x112xbf16>
    %c0_31 = arith.constant 0 : index
    %c0_32 = arith.constant 0 : index
    %c0_33 = arith.constant 0 : index
    %49 = vector.load %arg5[%c0_31, %c0_32, %c0_33] : memref<2x14x28xbf16, #tpu.memory_space<vmem>>, vector<1x14x28xbf16>
    %50 = vector.shape_cast %49 : vector<1x14x28xbf16> to vector<14x28xbf16>
    %c1_34 = arith.constant 1 : index
    %c0_35 = arith.constant 0 : index
    %c0_36 = arith.constant 0 : index
    %51 = vector.load %arg5[%c1_34, %c0_35, %c0_36] : memref<2x14x28xbf16, #tpu.memory_space<vmem>>, vector<1x14x28xbf16>
    %52 = vector.shape_cast %51 : vector<1x14x28xbf16> to vector<14x28xbf16>
    %53 = vector.extract_strided_slice %48 {offsets = [0, 0], sizes = [28, 112], strides = [1, 1]} : vector<56x112xbf16> to vector<28x112xbf16>
    %cst_37 = arith.constant dense<0.000000e+00> : vector<14x112xf32>
    %54 = tpu.matmul %50, %53, %cst_37 {dimension_numbers = #tpu.dot_dimension_numbers<[1], [0], [0], [1], [0, 0, 1, 1], [], []>} : vector<14x28xbf16>, vector<28x112xbf16>, vector<14x112xf32> -> vector<14x112xf32>
    %cst_38 = arith.constant dense<0.000000e+00> : vector<14x112xf32>
    %55 = tpu.matmul %52, %53, %cst_38 {dimension_numbers = #tpu.dot_dimension_numbers<[1], [0], [0], [1], [0, 0, 1, 1], [], []>} : vector<14x28xbf16>, vector<28x112xbf16>, vector<14x112xf32> -> vector<14x112xf32>
    %56 = arith.maximumf %54, %55 : vector<14x112xf32>
    %57 = arith.truncf %56 : vector<14x112xf32> to vector<14x112xbf16>
    %58 = vector.extract_strided_slice %57 {offsets = [0, 0], sizes = [10, 112], strides = [1, 1]} : vector<14x112xbf16> to vector<10x112xbf16>
    %c0_39 = arith.constant 0 : index
    %c0_40 = arith.constant 0 : index
    %59 = vector.load %arg17[%c0_39, %c0_40] : memref<20x560xbf16, #tpu.memory_space<vmem>>, vector<10x112xbf16>
    tpu.vector_store %arg17[%c0_39, %c0_40], %58 {strides = array<i32>} : memref<20x560xbf16, #tpu.memory_space<vmem>>, vector<10x112xbf16>,
    %60 = vector.extract_strided_slice %57 {offsets = [1, 0], sizes = [10, 112], strides = [1, 1]} : vector<14x112xbf16> to vector<10x112xbf16>
    %c0_41 = arith.constant 0 : index
    %c112 = arith.constant 112 : index
    %61 = vector.load %arg17[%c0_41, %c112] : memref<20x560xbf16, #tpu.memory_space<vmem>>, vector<10x112xbf16>
    tpu.vector_store %arg17[%c0_41, %c112], %60 {strides = array<i32>} : memref<20x560xbf16, #tpu.memory_space<vmem>>, vector<10x112xbf16>,
    %62 = vector.extract_strided_slice %57 {offsets = [2, 0], sizes = [10, 112], strides = [1, 1]} : vector<14x112xbf16> to vector<10x112xbf16>
    %c0_42 = arith.constant 0 : index
    %c224 = arith.constant 224 : index
    %63 = vector.load %arg17[%c0_42, %c224] : memref<20x560xbf16, #tpu.memory_space<vmem>>, vector<10x112xbf16>
    tpu.vector_store %arg17[%c0_42, %c224], %62 {strides = array<i32>} : memref<20x560xbf16, #tpu.memory_space<vmem>>, vector<10x112xbf16>,
    %64 = vector.extract_strided_slice %57 {offsets = [3, 0], sizes = [10, 112], strides = [1, 1]} : vector<14x112xbf16> to vector<10x112xbf16>
    %c0_43 = arith.constant 0 : index
    %c336 = arith.constant 336 : index
    %65 = vector.load %arg17[%c0_43, %c336] : memref<20x560xbf16, #tpu.memory_space<vmem>>, vector<10x112xbf16>
    tpu.vector_store %arg17[%c0_43, %c336], %64 {strides = array<i32>} : memref<20x560xbf16, #tpu.memory_space<vmem>>, vector<10x112xbf16>,
    %66 = vector.extract_strided_slice %57 {offsets = [4, 0], sizes = [10, 112], strides = [1, 1]} : vector<14x112xbf16> to vector<10x112xbf16>
    %c0_44 = arith.constant 0 : index
    %c448 = arith.constant 448 : index
    %67 = vector.load %arg17[%c0_44, %c448] : memref<20x560xbf16, #tpu.memory_space<vmem>>, vector<10x112xbf16>
    tpu.vector_store %arg17[%c0_44, %c448], %66 {strides = array<i32>} : memref<20x560xbf16, #tpu.memory_space<vmem>>, vector<10x112xbf16>,
    %68 = vector.extract_strided_slice %48 {offsets = [28, 0], sizes = [28, 112], strides = [1, 1]} : vector<56x112xbf16> to vector<28x112xbf16>
    %cst_45 = arith.constant dense<0.000000e+00> : vector<14x112xf32>
    %69 = tpu.matmul %50, %68, %cst_45 {dimension_numbers = #tpu.dot_dimension_numbers<[1], [0], [0], [1], [0, 0, 1, 1], [], []>} : vector<14x28xbf16>, vector<28x112xbf16>, vector<14x112xf32> -> vector<14x112xf32>
    %cst_46 = arith.constant dense<0.000000e+00> : vector<14x112xf32>
    %70 = tpu.matmul %52, %68, %cst_46 {dimension_numbers = #tpu.dot_dimension_numbers<[1], [0], [0], [1], [0, 0, 1, 1], [], []>} : vector<14x28xbf16>, vector<28x112xbf16>, vector<14x112xf32> -> vector<14x112xf32>
    %71 = arith.maximumf %69, %70 : vector<14x112xf32>
    %72 = arith.truncf %71 : vector<14x112xf32> to vector<14x112xbf16>
    %73 = vector.extract_strided_slice %72 {offsets = [0, 0], sizes = [10, 112], strides = [1, 1]} : vector<14x112xbf16> to vector<10x112xbf16>
    %c10 = arith.constant 10 : index
    %c0_47 = arith.constant 0 : index
    %74 = vector.load %arg17[%c10, %c0_47] : memref<20x560xbf16, #tpu.memory_space<vmem>>, vector<10x112xbf16>
    tpu.vector_store %arg17[%c10, %c0_47], %73 {strides = array<i32>} : memref<20x560xbf16, #tpu.memory_space<vmem>>, vector<10x112xbf16>,
    %75 = vector.extract_strided_slice %72 {offsets = [1, 0], sizes = [10, 112], strides = [1, 1]} : vector<14x112xbf16> to vector<10x112xbf16>
    %c10_48 = arith.constant 10 : index
    %c112_49 = arith.constant 112 : index
    %76 = vector.load %arg17[%c10_48, %c112_49] : memref<20x560xbf16, #tpu.memory_space<vmem>>, vector<10x112xbf16>
    tpu.vector_store %arg17[%c10_48, %c112_49], %75 {strides = array<i32>} : memref<20x560xbf16, #tpu.memory_space<vmem>>, vector<10x112xbf16>,
    %77 = vector.extract_strided_slice %72 {offsets = [2, 0], sizes = [10, 112], strides = [1, 1]} : vector<14x112xbf16> to vector<10x112xbf16>
    %c10_50 = arith.constant 10 : index
    %c224_51 = arith.constant 224 : index
    %78 = vector.load %arg17[%c10_50, %c224_51] : memref<20x560xbf16, #tpu.memory_space<vmem>>, vector<10x112xbf16>
    tpu.vector_store %arg17[%c10_50, %c224_51], %77 {strides = array<i32>} : memref<20x560xbf16, #tpu.memory_space<vmem>>, vector<10x112xbf16>,
    %79 = vector.extract_strided_slice %72 {offsets = [3, 0], sizes = [10, 112], strides = [1, 1]} : vector<14x112xbf16> to vector<10x112xbf16>
    %c10_52 = arith.constant 10 : index
    %c336_53 = arith.constant 336 : index
    %80 = vector.load %arg17[%c10_52, %c336_53] : memref<20x560xbf16, #tpu.memory_space<vmem>>, vector<10x112xbf16>
    tpu.vector_store %arg17[%c10_52, %c336_53], %79 {strides = array<i32>} : memref<20x560xbf16, #tpu.memory_space<vmem>>, vector<10x112xbf16>,
    %81 = vector.extract_strided_slice %72 {offsets = [4, 0], sizes = [10, 112], strides = [1, 1]} : vector<14x112xbf16> to vector<10x112xbf16>
    %c10_54 = arith.constant 10 : index
    %c448_55 = arith.constant 448 : index
    %82 = vector.load %arg17[%c10_54, %c448_55] : memref<20x560xbf16, #tpu.memory_space<vmem>>, vector<10x112xbf16>
    tpu.vector_store %arg17[%c10_54, %c448_55], %81 {strides = array<i32>} : memref<20x560xbf16, #tpu.memory_space<vmem>>, vector<10x112xbf16>,
    %c0_56 = arith.constant 0 : index
    %c0_57 = arith.constant 0 : index
    %83 = vector.load %arg17[%c0_56, %c0_57] : memref<20x560xbf16, #tpu.memory_space<vmem>>, vector<20x560xbf16>
    %c0_58 = arith.constant 0 : index
    %c0_59 = arith.constant 0 : index
    %84 = vector.load %arg6[%c0_58, %c0_59] : memref<560x160xbf16, #tpu.memory_space<vmem>>, vector<560x160xbf16>
    %cst_60 = arith.constant dense<0.000000e+00> : vector<20x160xf32>
    %85 = tpu.matmul %83, %84, %cst_60 {dimension_numbers = #tpu.dot_dimension_numbers<[1], [0], [0], [1], [0, 0, 1, 1], [], []>} : vector<20x560xbf16>, vector<560x160xbf16>, vector<20x160xf32> -> vector<20x160xf32>
    %c0_61 = arith.constant 0 : index
    %c0_62 = arith.constant 0 : index
    %86 = vector.load %arg7[%c0_61, %c0_62] : memref<1x160xf32, #tpu.memory_space<vmem>>, vector<1x160xf32>
    %87 = vector.broadcast %86 : vector<1x160xf32> to vector<20x160xf32>
    %88 = arith.addf %85, %87 : vector<20x160xf32>
    %cst_63 = arith.constant 0.000000e+00 : f32
    %89 = vector.broadcast %cst_63 : f32 to vector<20x160xf32>
    %90 = arith.maximumf %88, %89 : vector<20x160xf32>
    %91 = arith.truncf %90 : vector<20x160xf32> to vector<20x160xbf16>
    %c0_64 = arith.constant 0 : index
    %c0_65 = arith.constant 0 : index
    %c0_66 = arith.constant 0 : index
    %92 = vector.load %arg8[%c0_64, %c0_65, %c0_66] : memref<2x160x80xbf16, #tpu.memory_space<vmem>>, vector<1x160x80xbf16>
    %93 = vector.shape_cast %92 : vector<1x160x80xbf16> to vector<160x80xbf16>
    %cst_67 = arith.constant dense<0.000000e+00> : vector<20x80xf32>
    %94 = tpu.matmul %91, %93, %cst_67 {dimension_numbers = #tpu.dot_dimension_numbers<[1], [0], [0], [1], [0, 0, 1, 1], [], []>} : vector<20x160xbf16>, vector<160x80xbf16>, vector<20x80xf32> -> vector<20x80xf32>
    %c1_68 = arith.constant 1 : index
    %c0_69 = arith.constant 0 : index
    %c0_70 = arith.constant 0 : index
    %95 = vector.load %arg8[%c1_68, %c0_69, %c0_70] : memref<2x160x80xbf16, #tpu.memory_space<vmem>>, vector<1x160x80xbf16>
    %96 = vector.shape_cast %95 : vector<1x160x80xbf16> to vector<160x80xbf16>
    %cst_71 = arith.constant dense<0.000000e+00> : vector<20x80xf32>
    %97 = tpu.matmul %91, %96, %cst_71 {dimension_numbers = #tpu.dot_dimension_numbers<[1], [0], [0], [1], [0, 0, 1, 1], [], []>} : vector<20x160xbf16>, vector<160x80xbf16>, vector<20x80xf32> -> vector<20x80xf32>
    %98 = arith.maximumf %94, %97 : vector<20x80xf32>
    %cst_72 = arith.constant 0.000000e+00 : bf16
    %99 = vector.broadcast %cst_72 : bf16 to vector<2x112xbf16>
    %c0_73 = arith.constant 0 : index
    %c400 = arith.constant 400 : index
    %100 = vector.load %arg18[%c0_73, %c400] : memref<2x512xbf16, #tpu.memory_space<vmem>>, vector<2x112xbf16>
    tpu.vector_store %arg18[%c0_73, %c400], %99 {strides = array<i32>} : memref<2x512xbf16, #tpu.memory_space<vmem>>, vector<2x112xbf16>,
    %101 = vector.extract_strided_slice %98 {offsets = [0, 0], sizes = [1, 80], strides = [1, 1]} : vector<20x80xf32> to vector<1x80xf32>
    %102 = vector.extract_strided_slice %98 {offsets = [1, 0], sizes = [1, 80], strides = [1, 1]} : vector<20x80xf32> to vector<1x80xf32>
    %103 = arith.maximumf %101, %102 : vector<1x80xf32>
    %104 = arith.truncf %103 : vector<1x80xf32> to vector<1x80xbf16>
    %c0_74 = arith.constant 0 : index
    %c0_75 = arith.constant 0 : index
    %105 = vector.load %arg18[%c0_74, %c0_75] : memref<2x512xbf16, #tpu.memory_space<vmem>>, vector<1x80xbf16>
    tpu.vector_store %arg18[%c0_74, %c0_75], %104 {strides = array<i32>} : memref<2x512xbf16, #tpu.memory_space<vmem>>, vector<1x80xbf16>,
    %106 = vector.extract_strided_slice %98 {offsets = [2, 0], sizes = [1, 80], strides = [1, 1]} : vector<20x80xf32> to vector<1x80xf32>
    %107 = vector.extract_strided_slice %98 {offsets = [3, 0], sizes = [1, 80], strides = [1, 1]} : vector<20x80xf32> to vector<1x80xf32>
    %108 = arith.maximumf %106, %107 : vector<1x80xf32>
    %109 = arith.truncf %108 : vector<1x80xf32> to vector<1x80xbf16>
    %c0_76 = arith.constant 0 : index
    %c80 = arith.constant 80 : index
    %110 = vector.load %arg18[%c0_76, %c80] : memref<2x512xbf16, #tpu.memory_space<vmem>>, vector<1x80xbf16>
    tpu.vector_store %arg18[%c0_76, %c80], %109 {strides = array<i32>} : memref<2x512xbf16, #tpu.memory_space<vmem>>, vector<1x80xbf16>,
    %111 = vector.extract_strided_slice %98 {offsets = [4, 0], sizes = [1, 80], strides = [1, 1]} : vector<20x80xf32> to vector<1x80xf32>
    %112 = vector.extract_strided_slice %98 {offsets = [5, 0], sizes = [1, 80], strides = [1, 1]} : vector<20x80xf32> to vector<1x80xf32>
    %113 = arith.maximumf %111, %112 : vector<1x80xf32>
    %114 = arith.truncf %113 : vector<1x80xf32> to vector<1x80xbf16>
    %c0_77 = arith.constant 0 : index
    %c160 = arith.constant 160 : index
    %115 = vector.load %arg18[%c0_77, %c160] : memref<2x512xbf16, #tpu.memory_space<vmem>>, vector<1x80xbf16>
    tpu.vector_store %arg18[%c0_77, %c160], %114 {strides = array<i32>} : memref<2x512xbf16, #tpu.memory_space<vmem>>, vector<1x80xbf16>,
    %116 = vector.extract_strided_slice %98 {offsets = [6, 0], sizes = [1, 80], strides = [1, 1]} : vector<20x80xf32> to vector<1x80xf32>
    %117 = vector.extract_strided_slice %98 {offsets = [7, 0], sizes = [1, 80], strides = [1, 1]} : vector<20x80xf32> to vector<1x80xf32>
    %118 = arith.maximumf %116, %117 : vector<1x80xf32>
    %119 = arith.truncf %118 : vector<1x80xf32> to vector<1x80xbf16>
    %c0_78 = arith.constant 0 : index
    %c240 = arith.constant 240 : index
    %120 = vector.load %arg18[%c0_78, %c240] : memref<2x512xbf16, #tpu.memory_space<vmem>>, vector<1x80xbf16>
    tpu.vector_store %arg18[%c0_78, %c240], %119 {strides = array<i32>} : memref<2x512xbf16, #tpu.memory_space<vmem>>, vector<1x80xbf16>,
    %121 = vector.extract_strided_slice %98 {offsets = [8, 0], sizes = [1, 80], strides = [1, 1]} : vector<20x80xf32> to vector<1x80xf32>
    %122 = vector.extract_strided_slice %98 {offsets = [9, 0], sizes = [1, 80], strides = [1, 1]} : vector<20x80xf32> to vector<1x80xf32>
    %123 = arith.maximumf %121, %122 : vector<1x80xf32>
    %124 = arith.truncf %123 : vector<1x80xf32> to vector<1x80xbf16>
    %c0_79 = arith.constant 0 : index
    %c320 = arith.constant 320 : index
    %125 = vector.load %arg18[%c0_79, %c320] : memref<2x512xbf16, #tpu.memory_space<vmem>>, vector<1x80xbf16>
    tpu.vector_store %arg18[%c0_79, %c320], %124 {strides = array<i32>} : memref<2x512xbf16, #tpu.memory_space<vmem>>, vector<1x80xbf16>,
    %126 = vector.extract_strided_slice %98 {offsets = [10, 0], sizes = [1, 80], strides = [1, 1]} : vector<20x80xf32> to vector<1x80xf32>
    %127 = vector.extract_strided_slice %98 {offsets = [11, 0], sizes = [1, 80], strides = [1, 1]} : vector<20x80xf32> to vector<1x80xf32>
    %128 = arith.maximumf %126, %127 : vector<1x80xf32>
    %129 = arith.truncf %128 : vector<1x80xf32> to vector<1x80xbf16>
    %c1_80 = arith.constant 1 : index
    %c0_81 = arith.constant 0 : index
    %130 = vector.load %arg18[%c1_80, %c0_81] : memref<2x512xbf16, #tpu.memory_space<vmem>>, vector<1x80xbf16>
    tpu.vector_store %arg18[%c1_80, %c0_81], %129 {strides = array<i32>} : memref<2x512xbf16, #tpu.memory_space<vmem>>, vector<1x80xbf16>,
    %131 = vector.extract_strided_slice %98 {offsets = [12, 0], sizes = [1, 80], strides = [1, 1]} : vector<20x80xf32> to vector<1x80xf32>
    %132 = vector.extract_strided_slice %98 {offsets = [13, 0], sizes = [1, 80], strides = [1, 1]} : vector<20x80xf32> to vector<1x80xf32>
    %133 = arith.maximumf %131, %132 : vector<1x80xf32>
    %134 = arith.truncf %133 : vector<1x80xf32> to vector<1x80xbf16>
    %c1_82 = arith.constant 1 : index
    %c80_83 = arith.constant 80 : index
    %135 = vector.load %arg18[%c1_82, %c80_83] : memref<2x512xbf16, #tpu.memory_space<vmem>>, vector<1x80xbf16>
    tpu.vector_store %arg18[%c1_82, %c80_83], %134 {strides = array<i32>} : memref<2x512xbf16, #tpu.memory_space<vmem>>, vector<1x80xbf16>,
    %136 = vector.extract_strided_slice %98 {offsets = [14, 0], sizes = [1, 80], strides = [1, 1]} : vector<20x80xf32> to vector<1x80xf32>
    %137 = vector.extract_strided_slice %98 {offsets = [15, 0], sizes = [1, 80], strides = [1, 1]} : vector<20x80xf32> to vector<1x80xf32>
    %138 = arith.maximumf %136, %137 : vector<1x80xf32>
    %139 = arith.truncf %138 : vector<1x80xf32> to vector<1x80xbf16>
    %c1_84 = arith.constant 1 : index
    %c160_85 = arith.constant 160 : index
    %140 = vector.load %arg18[%c1_84, %c160_85] : memref<2x512xbf16, #tpu.memory_space<vmem>>, vector<1x80xbf16>
    tpu.vector_store %arg18[%c1_84, %c160_85], %139 {strides = array<i32>} : memref<2x512xbf16, #tpu.memory_space<vmem>>, vector<1x80xbf16>,
    %141 = vector.extract_strided_slice %98 {offsets = [16, 0], sizes = [1, 80], strides = [1, 1]} : vector<20x80xf32> to vector<1x80xf32>
    %142 = vector.extract_strided_slice %98 {offsets = [17, 0], sizes = [1, 80], strides = [1, 1]} : vector<20x80xf32> to vector<1x80xf32>
    %143 = arith.maximumf %141, %142 : vector<1x80xf32>
    %144 = arith.truncf %143 : vector<1x80xf32> to vector<1x80xbf16>
    %c1_86 = arith.constant 1 : index
    %c240_87 = arith.constant 240 : index
    %145 = vector.load %arg18[%c1_86, %c240_87] : memref<2x512xbf16, #tpu.memory_space<vmem>>, vector<1x80xbf16>
    tpu.vector_store %arg18[%c1_86, %c240_87], %144 {strides = array<i32>} : memref<2x512xbf16, #tpu.memory_space<vmem>>, vector<1x80xbf16>,
    %146 = vector.extract_strided_slice %98 {offsets = [18, 0], sizes = [1, 80], strides = [1, 1]} : vector<20x80xf32> to vector<1x80xf32>
    %147 = vector.extract_strided_slice %98 {offsets = [19, 0], sizes = [1, 80], strides = [1, 1]} : vector<20x80xf32> to vector<1x80xf32>
    %148 = arith.maximumf %146, %147 : vector<1x80xf32>
    %149 = arith.truncf %148 : vector<1x80xf32> to vector<1x80xbf16>
    %c1_88 = arith.constant 1 : index
    %c320_89 = arith.constant 320 : index
    %150 = vector.load %arg18[%c1_88, %c320_89] : memref<2x512xbf16, #tpu.memory_space<vmem>>, vector<1x80xbf16>
    tpu.vector_store %arg18[%c1_88, %c320_89], %149 {strides = array<i32>} : memref<2x512xbf16, #tpu.memory_space<vmem>>, vector<1x80xbf16>,
    %c0_90 = arith.constant 0 : index
    %c0_91 = arith.constant 0 : index
    %151 = vector.load %arg18[%c0_90, %c0_91] : memref<2x512xbf16, #tpu.memory_space<vmem>>, vector<2x512xbf16>
    %c0_92 = arith.constant 0 : index
    %c0_93 = arith.constant 0 : index
    %152 = vector.load %arg9[%c0_92, %c0_93] : memref<512x128xbf16, #tpu.memory_space<vmem>>, vector<512x128xbf16>
    %cst_94 = arith.constant dense<0.000000e+00> : vector<2x128xf32>
    %153 = tpu.matmul %151, %152, %cst_94 {dimension_numbers = #tpu.dot_dimension_numbers<[1], [0], [0], [1], [0, 0, 1, 1], [], []>} : vector<2x512xbf16>, vector<512x128xbf16>, vector<2x128xf32> -> vector<2x128xf32>
    %c0_95 = arith.constant 0 : index
    %c0_96 = arith.constant 0 : index
    %154 = vector.load %arg10[%c0_95, %c0_96] : memref<1x128xf32, #tpu.memory_space<vmem>>, vector<1x128xf32>
    %155 = vector.broadcast %154 : vector<1x128xf32> to vector<2x128xf32>
    %156 = arith.addf %153, %155 : vector<2x128xf32>
    %cst_97 = arith.constant 0.000000e+00 : f32
    %157 = vector.broadcast %cst_97 : f32 to vector<2x128xf32>
    %158 = arith.maximumf %156, %157 : vector<2x128xf32>
    %159 = arith.truncf %158 : vector<2x128xf32> to vector<2x128xbf16>
    %c0_98 = arith.constant 0 : index
    %c0_99 = arith.constant 0 : index
    %160 = vector.load %arg11[%c0_98, %c0_99] : memref<128x128xbf16, #tpu.memory_space<vmem>>, vector<128x128xbf16>
    %cst_100 = arith.constant dense<0.000000e+00> : vector<2x128xf32>
    %161 = tpu.matmul %159, %160, %cst_100 {dimension_numbers = #tpu.dot_dimension_numbers<[1], [0], [0], [1], [0, 0, 1, 1], [], []>} : vector<2x128xbf16>, vector<128x128xbf16>, vector<2x128xf32> -> vector<2x128xf32>
    %c0_101 = arith.constant 0 : index
    %c0_102 = arith.constant 0 : index
    %162 = vector.load %arg12[%c0_101, %c0_102] : memref<1x128xf32, #tpu.memory_space<vmem>>, vector<1x128xf32>
    %163 = vector.broadcast %162 : vector<1x128xf32> to vector<2x128xf32>
    %164 = arith.addf %161, %163 : vector<2x128xf32>
    %cst_103 = arith.constant 0.000000e+00 : f32
    %165 = vector.broadcast %cst_103 : f32 to vector<2x128xf32>
    %166 = arith.maximumf %164, %165 : vector<2x128xf32>
    %167 = arith.truncf %166 : vector<2x128xf32> to vector<2x128xbf16>
    %c0_104 = arith.constant 0 : index
    %c0_105 = arith.constant 0 : index
    %168 = vector.load %arg13[%c0_104, %c0_105] : memref<128x128xbf16, #tpu.memory_space<vmem>>, vector<128x128xbf16>
    %cst_106 = arith.constant dense<0.000000e+00> : vector<2x128xf32>
    %169 = tpu.matmul %167, %168, %cst_106 {dimension_numbers = #tpu.dot_dimension_numbers<[1], [0], [0], [1], [0, 0, 1, 1], [], []>} : vector<2x128xbf16>, vector<128x128xbf16>, vector<2x128xf32> -> vector<2x128xf32>
    %c0_107 = arith.constant 0 : index
    %c0_108 = arith.constant 0 : index
    %170 = vector.load %arg14[%c0_107, %c0_108] : memref<1x128xf32, #tpu.memory_space<vmem>>, vector<1x128xf32>
    %171 = vector.broadcast %170 : vector<1x128xf32> to vector<2x128xf32>
    %172 = arith.addf %169, %171 : vector<2x128xf32>
    %c0_109 = arith.constant 0 : index
    %c0_110 = arith.constant 0 : index
    %173 = vector.load %arg15[%c0_109, %c0_110] : memref<2x128xf32, #tpu.memory_space<vmem>>, vector<2x128xf32>
    tpu.vector_store %arg15[%c0_109, %c0_110], %172 {strides = array<i32>} : memref<2x128xf32, #tpu.memory_space<vmem>>, vector<2x128xf32>,
    return
  }
  func.func @transform_0(%arg0: i32) -> (i32, i32, i32) {
    %c0_i32 = arith.constant 0 : i32
    %c0_i32_0 = arith.constant 0 : i32
    %c0_i32_1 = arith.constant 0 : i32
    return %arg0, %c0_i32, %c0_i32_0 : i32, i32, i32
  }
  func.func @transform_1(%arg0: i32) -> (i32, i32) {
    %c0_i32 = arith.constant 0 : i32
    %c0_i32_0 = arith.constant 0 : i32
    %c0_i32_1 = arith.constant 0 : i32
    return %c0_i32, %c0_i32_0 : i32, i32
  }
  func.func @transform_2(%arg0: i32) -> (i32, i32) {
    %c0_i32 = arith.constant 0 : i32
    %c0_i32_0 = arith.constant 0 : i32
    %c0_i32_1 = arith.constant 0 : i32
    return %c0_i32, %c0_i32_0 : i32, i32
  }
  func.func @transform_3(%arg0: i32) -> (i32, i32, i32) {
    %c0_i32 = arith.constant 0 : i32
    %c0_i32_0 = arith.constant 0 : i32
    %c0_i32_1 = arith.constant 0 : i32
    %c0_i32_2 = arith.constant 0 : i32
    return %c0_i32, %c0_i32_0, %c0_i32_1 : i32, i32, i32
  }
  func.func @transform_4(%arg0: i32) -> (i32, i32, i32) {
    %c0_i32 = arith.constant 0 : i32
    %c0_i32_0 = arith.constant 0 : i32
    %c0_i32_1 = arith.constant 0 : i32
    %c0_i32_2 = arith.constant 0 : i32
    return %c0_i32, %c0_i32_0, %c0_i32_1 : i32, i32, i32
  }
  func.func @transform_5(%arg0: i32) -> (i32, i32) {
    %c0_i32 = arith.constant 0 : i32
    %c0_i32_0 = arith.constant 0 : i32
    %c0_i32_1 = arith.constant 0 : i32
    return %c0_i32, %c0_i32_0 : i32, i32
  }
  func.func @transform_6(%arg0: i32) -> (i32, i32) {
    %c0_i32 = arith.constant 0 : i32
    %c0_i32_0 = arith.constant 0 : i32
    %c0_i32_1 = arith.constant 0 : i32
    return %c0_i32, %c0_i32_0 : i32, i32
  }
  func.func @transform_7(%arg0: i32) -> (i32, i32, i32) {
    %c0_i32 = arith.constant 0 : i32
    %c0_i32_0 = arith.constant 0 : i32
    %c0_i32_1 = arith.constant 0 : i32
    %c0_i32_2 = arith.constant 0 : i32
    return %c0_i32, %c0_i32_0, %c0_i32_1 : i32, i32, i32
  }
  func.func @transform_8(%arg0: i32) -> (i32, i32) {
    %c0_i32 = arith.constant 0 : i32
    %c0_i32_0 = arith.constant 0 : i32
    %c0_i32_1 = arith.constant 0 : i32
    return %c0_i32, %c0_i32_0 : i32, i32
  }
  func.func @transform_9(%arg0: i32) -> (i32, i32) {
    %c0_i32 = arith.constant 0 : i32
    %c0_i32_0 = arith.constant 0 : i32
    %c0_i32_1 = arith.constant 0 : i32
    return %c0_i32, %c0_i32_0 : i32, i32
  }
  func.func @transform_10(%arg0: i32) -> (i32, i32) {
    %c0_i32 = arith.constant 0 : i32
    %c0_i32_0 = arith.constant 0 : i32
    %c0_i32_1 = arith.constant 0 : i32
    return %c0_i32, %c0_i32_0 : i32, i32
  }
  func.func @transform_11(%arg0: i32) -> (i32, i32) {
    %c0_i32 = arith.constant 0 : i32
    %c0_i32_0 = arith.constant 0 : i32
    %c0_i32_1 = arith.constant 0 : i32
    return %c0_i32, %c0_i32_0 : i32, i32
  }
  func.func @transform_12(%arg0: i32) -> (i32, i32) {
    %c0_i32 = arith.constant 0 : i32
    %c0_i32_0 = arith.constant 0 : i32
    %c0_i32_1 = arith.constant 0 : i32
    return %c0_i32, %c0_i32_0 : i32, i32
  }
  func.func @transform_13(%arg0: i32) -> (i32, i32) {
    %c0_i32 = arith.constant 0 : i32
    %c0_i32_0 = arith.constant 0 : i32
    %c0_i32_1 = arith.constant 0 : i32
    return %c0_i32, %c0_i32_0 : i32, i32
  }
  func.func @transform_14(%arg0: i32) -> (i32, i32) {
    %c0_i32 = arith.constant 0 : i32
    %c0_i32_0 = arith.constant 0 : i32
    return %arg0, %c0_i32 : i32, i32
  }
}

</mosaic_0001>

<bundles_post_ra>
// kernel: net_forward.1
= control target key start
LH: loop header
LB: loop body
LE: loop exit
PB: predicated region body
PF: predicated region fallthrough
CT: control target
= control target key end

     0   :  { %vm141_vm0 = vcmask 1042432   ;;  %vm142_vm1 = vcmask 1046532   ;;  %vm81_vm3 = vsmask.f32 3328  ;;  %vm82_vm4 = vsmask.f32 7440  ;;  %s5272_s0 = inlined_call_operand.vmem [shape: f32[2,32,32], index: 0, kind: input, shape index: {}]   ;;  %s5273_s1 = inlined_call_operand.vmem [shape: bf16[160,224], index: 1, kind: input, shape index: {}]   ;;  %s5274_s2 = inlined_call_operand.vmem [shape: f32[1,224], index: 2, kind: input, shape index: {}]   ;;  %s5275_s3 = inlined_call_operand.vmem [shape: bf16[2,224,112], index: 3, kind: input, shape index: {}]   ;;  %s5276_s4 = inlined_call_operand.vmem [shape: bf16[2,14,28], index: 4, kind: input, shape index: {}]   ;;  %s5277_s5 = inlined_call_operand.vmem [shape: bf16[560,160], index: 5, kind: input, shape index: {}]   ;;  %s5278_s6 = inlined_call_operand.vmem [shape: f32[1,160], index: 6, kind: input, shape index: {}]   ;;  %s5279_s7 = inlined_call_operand.vmem [shape: bf16[2,160,80], index: 7, kind: input, shape index: {}]   ;;  %s5280_s8 = inlined_call_operand.vmem [shape: bf16[512,128], index: 8, kind: input, shape index: {}]   ;;  %s5281_s9 = inlined_call_operand.vmem [shape: f32[1,128], index: 9, kind: input, shape index: {}]   ;;  %s5282_s10 = inlined_call_operand.vmem [shape: bf16[128,128], index: 10, kind: input, shape index: {}]   ;;  %s5283_s11 = inlined_call_operand.vmem [shape: f32[1,128], index: 11, kind: input, shape index: {}]   ;;  %s5284_s12 = inlined_call_operand.vmem [shape: bf16[128,128], index: 12, kind: input, shape index: {}]   ;;  %s5285_s13 = inlined_call_operand.vmem [shape: f32[1,128], index: 13, kind: input, shape index: {}]   ;;  %s5286_s14 = inlined_call_operand.hbm [shape: f32[2,128], index: 14, kind: output, shape index: {}]  }
   0x1   :  { %v49_v0 = vld [vmem:[%s5272_s0] sm:$0xff]  ;;  %v50_v1 = vld [vmem:[%s5272_s0 + $0x8] sm:$0xff]  ;;  %v51_v2 = vld [vmem:[%s5272_s0 + $0x10] sm:$0xff]  ;;  %vm173_vm5 = vsmask.f32 2304  ;;  %s3996_s23 = smov 64  }
   0x2   :  { %v4090_v3 = vpack.c.bf16 %v49_v0, %v49_v0  ;;  %v4092_v4 = vpack.c.bf16 %v50_v1, %v50_v1  ;;  %v4094_v5 = vpack.c.bf16 %v51_v2, %v51_v2  ;;  %v52_v6 = vld [vmem:[%s5272_s0 + $0x18] sm:$0xff]  ;;  %vm4099_vm2 = vmor %vm141_vm0, %vm142_vm1  ;;  %vm174_vm6 = vsmask.f32 6416  ;;  %v3723_v19 = vld [vmem:[%s5273_s1 + $0x4] ss:$8 sps:$4 sm:$0xff]   ;;  %s3997_s20 = smov 32  }
   0x3   :  { %v4103_v8 = vpack.c.bf16 %v52_v6, %v52_v6  ;;  %v3725_v24 = vld [vmem:[%s5273_s1] ss:$8 sps:$4 sm:$0xff]   ;;  %579 = vmatprep.subr.bf16.mxu0 %v3723_v19  ;;  %v3726_v34 = vld [vmem:[%s5273_s1 + $0x14] ss:$8 sps:$4 sm:$0xff]   ;;  %vm4143_vm7 = vmor %vm81_vm3, %vm82_vm4  ;;  %s3998_s16 = smov 96   ;;  %vm75_vm9 = vcmask 257024  }
   0x4   :  { %v3238_v9 = vrot.slane %v4090_v3, 9  ;;  %v146_v10 = vrot.slane %v4092_v4, 5  ;;  %v149_v11 = vrot.slane %v4094_v5, 5  ;;  %v85_v12 = vshrl.u32 %v4090_v3, 16  ;;  %v53_v29 = vld [vmem:[%s5272_s0 + $0x20] sm:$0xff]  ;;  %580 = vmatpush1.bf16.msra.mxu0 %v3725_v24  ;;  %vm4157_vm8 = vmor %vm173_vm5, %vm174_vm6  ;;  %v54_v6 = vld [vmem:[%s5272_s0 + $0x28] sm:$0xff] }
   0x5   :  { %v88_v13 = vshll.u32 %v4090_v3, 16  ;;  %v94_v14 = vshll.u32 %v4092_v4, 16  ;;  %v114_v17 = vshll.u32 %v4103_v8, 16  ;;  %v118_v18 = vshrl.u32 %v4103_v8, 16  ;;  %v3728_v40 = vld [vmem:[%s5273_s1 + $0x10] ss:$8 sps:$4 sm:$0xff]   ;;  %581 = vmatprep.subr.bf16.mxu0 %v3726_v34 }
   0x6   :  { %v147_v15 = vsel %vm4099_vm2, %v3238_v9, %v146_v10  ;;  %v148_v16 = vrot.slane %v146_v10, 4  ;;  %v87_v20 = vrot.slane %v85_v12, 4  ;;  %v98_v28 = vshrl.u32 %v4092_v4, 16  ;;  %v3729_v45 = vld [vmem:[%s5273_s1 + $0x24] ss:$8 sps:$4 sm:$0xff]  }
   0x7   :  { %155 = vrot.lane.b32.xlu1 %v147_v15, %s3996_s23  ;;  %v90_v21 = vrot.slane %v88_v13, 5  ;;  %v96_v22 = vrot.slane %v94_v14, 5  ;;  %v181_v23 = vrot.slane %v94_v14, 6  ;;  %v4128_v26 = vrot.slane %v114_v17, 5  ;;  %v3731_v55 = vld [vmem:[%s5273_s1 + $0x20] ss:$8 sps:$4 sm:$0xff]  }
   0x8   :  { %v150_v25 = vsel %vm4099_vm2, %v148_v16, %v149_v11  ;;  %v120_v27 = vrot.slane %v118_v18, 4  ;;  %v104_v31 = vshll.u32 %v4094_v5, 16  ;;  %v108_v32 = vshrl.u32 %v4094_v5, 16  ;;  %582 = vmatpush1.bf16.msra.mxu0 %v3728_v40  ;;  %v3732_v59 = vld [vmem:[%s5273_s1 + $0x34] ss:$8 sps:$4 sm:$0xff]  }
   0x9   :  { %v91_v30 = vor.u32 %v90_v21, %v87_v20  ;;  %v176_v33 = vrot.slane %v85_v12, 5  ;;  %v100_v37 = vrot.slane %v98_v28, 4  ;;  %v180_v38 = vrot.slane %v98_v28, 5  ;;  %583 = vmatprep.subr.bf16.mxu0 %v3729_v45  ;;  %v3734_v9 = vld [vmem:[%s5273_s1 + $0x30] ss:$8 sps:$4 sm:$0xff]  }
   0xa   :  { %v121_v36 = vor.u32 %v120_v27, %v4128_v26  ;;  %v177_v39 = vrot.slane %v88_v13, 6  ;;  %v106_v42 = vrot.slane %v104_v31, 5  ;;  %v185_v43 = vrot.slane %v108_v32, 5  ;;  %v55_v14 = vld [vmem:[%s5272_s0 + $0x30] sm:$0xff]  ;;  %v3735_v15 = vld [vmem:[%s5273_s1 + $0x44] ss:$8 sps:$4 sm:$0xff]  }
   0xb   :  { %157 = vrot.lane.b32.xlu1 %v150_v25, %s3996_s23  ;;  %v92_v41 = vrot.slane %v91_v30, 4  ;;  %v186_v44 = vrot.slane %v104_v31, 6  ;;  %v101_v47 = vor.u32 %v100_v37, %v96_v22  ;;  %v182_v49 = vor.u32 %v181_v23, %v180_v38  ;;  %76 = vst.msk [vmem:[#allocation2] sm:$0xf] %vm75_vm9, %v4090_v3  ;;  %77 = vst.msk [vmem:[#allocation2 + $0x8] sm:$0xf] %vm75_vm9, %v4092_v4 }
   0xc   :  { %v122_v46 = vrot.slane %v121_v36, 4  ;;  %v178_v50 = vor.u32 %v177_v39, %v176_v33  ;;  %v110_v53 = vrot.slane %v108_v32, 4  ;;  %v4165_v54 = vpack.c.bf16 %v53_v29, %v53_v29  ;;  %584 = vmatpush1.bf16.msra.mxu0 %v3731_v55  ;;  %78 = vst.msk [vmem:[#allocation2 + $0x10] sm:$0xf] %vm75_vm9, %v4094_v5  ;;  %v56_v32 = vld [vmem:[%s5272_s0 + $0x38] sm:$0xff] }
   0xd   :  { %v97_v51 = vsel %vm4143_vm7, %v92_v41, %v96_v22  ;;  %v4163_v52 = vor.u32 %v186_v44, %v185_v43  ;;  %v102_v56 = vrot.slane %v101_v47, 4  ;;  %v184_v57 = vrot.slane %v182_v49, 4  ;;  %585 = vmatprep.subr.bf16.mxu0 %v3732_v59  ;;  %v3738_v33 = vld [vmem:[%s5273_s1 + $0x54] ss:$8 sps:$4 sm:$0xff]   ;;  %v414_v59 = vld [vmem:[%s5273_s1 + $0x68] sm:$0xff] }
   0xe   :  { %123 = vrot.lane.b32.xlu0 %v97_v51, %s3997_s20  ;;  %v179_v58 = vrot.slane %v178_v50, 4  ;;  %v111_v60 = vor.u32 %v110_v53, %v106_v42  ;;  %v268_v61 = vshrl.u32 %v4165_v54, 16  ;;  %v271_v62 = vshll.u32 %v4165_v54, 16  ;;  %v411_v47 = vld [vmem:[%s5273_s1 + $0x50] sm:$0xff] }
   0xf   :  { %129 = vrot.lane.b32.xlu1 %v122_v46, %s3997_s20  ;;  %v107_v63 = vsel %vm4143_vm7, %v102_v56, %v106_v42  ;;  %v188_v0 = vsel %vm4157_vm8, %v184_v57, %v4163_v52  ;;  %v151_v1 = vrot.slane %v149_v11, 4  ;;  %v152_v2 = vrot.slane %v4103_v8, 5 }
  0x10   :  { %v3239_v10 = vrot.slane %v4090_v3, 10  ;;  %v183_v12 = vsel %vm4157_vm8, %v179_v58, %v182_v49  ;;  %v270_v13 = vrot.slane %v268_v61, 6  ;;  %v273_v11 = vrot.slane %v271_v62, 7  ;;  %586 = vmatpush1.bf16.msra.mxu0 %v3734_v9  ;;  %v412_v49 = vld [vmem:[%s5273_s1 + $0x58] sm:$0xff]  ;;  %v413_v58 = vld [vmem:[%s5273_s1 + $0x60] sm:$0xff] }
  0x11   :  { %v112_v16 = vrot.slane %v111_v60, 4  ;;  %v325_v19 = vrot.slane %v4165_v54, 7  ;;  %v190_v20 = vrot.slane %v118_v18, 5  ;;  %v191_v21 = vrot.slane %v114_v17, 6  ;;  %v3737_v18 = vld [vmem:[%s5273_s1 + $0x40] ss:$8 sps:$4 sm:$0xff]   ;;  %587 = vmatprep.subr.bf16.mxu0 %v3735_v15 }
  0x12   :  { %125 = vrot.lane.b32.xlu0 %v107_v63, %s3997_s20  ;;  %v218_v22 = vrot.slane %v4092_v4, 6  ;;  %v153_v23 = vsel %vm4099_vm2, %v151_v1, %v152_v2  ;;  %v4212_v24 = vpack.c.bf16 %v54_v6, %v54_v6  ;;  %v4214_v25 = vrot.slane %v152_v2, 4  ;;  %v3740_v60 = vld [vmem:[%s5273_s1 + $0x64] ss:$8 sps:$4 sm:$0xff]   ;;  %v415_v15 = vld [vmem:[%s5273_s1 + $0x70] sm:$0xff] }
  0x13   :  { %197 = vrot.lane.b32.xlu1 %v188_v0, %s3998_s16  ;;  %v4216_v27 = vrot.slane %v325_v19, 4  ;;  %v189_v28 = vrot.slane %v4163_v52, 4  ;;  %v4225_v17 = vpack.c.bf16 %v55_v14, %v55_v14  ;;  %v274_v29 = vor.u32 %v273_v11, %v270_v13  ;;  %v3742_v52 = vld [vmem:[%s5273_s1 + $0x74] ss:$8 sps:$4 sm:$0xff]  }
  0x14   :  { %vm5287_vm10 = vsmask.f32 1280  ;;  %v277_v30 = vshrl.u32 %v4212_v24, 16  ;;  %v280_v31 = vshll.u32 %v4212_v24, 16  ;;  %391 = vst.msk [vmem:[#allocation2 + $0x24] sm:$0xf] %vm75_vm9, %v4212_v24  ;;  %v117_v34 = vsel %vm4143_vm7, %v112_v16, %v4128_v26  ;;  %588 = vmatpush1.bf16.msra.mxu0 %v3737_v18 }
  0x15   :  { %v192_v36 = vor.u32 %v191_v21, %v190_v20  ;;  %v4245_v37 = vrot.slane %v268_v61, 7  ;;  %vm265_vm11 = vsmask.f32 5392  ;;  %392 = vst.msk [vmem:[#allocation2 + $0x2c] sm:$0xf] %vm75_vm9, %v4225_v17  ;;  %v275_v38 = vrot.slane %v274_v29, 4  ;;  %589 = vmatprep.subr.bf16.mxu0 %v3738_v33 }
  0x16   :  { %195 = vrot.lane.b32.xlu0 %v183_v12, %s3998_s16  ;;  %v279_v39 = vrot.slane %v277_v30, 6  ;;  %v282_v40 = vrot.slane %v280_v31, 7  ;;  %vm322_vm12 = vcmask 1040384   ;;  %v287_v42 = vshrl.u32 %v4225_v17, 16  ;;  %vm4269_vm0 = vmor %vm5287_vm10, %vm265_vm11  ;;  %v416_v16 = vld [vmem:[%s5273_s1 + $0x78] sm:$0xff] }
  0x17   :  { %159 = vrot.lane.b32.xlu1 %v153_v23, %s3996_s23  ;;  %v194_v41 = vrot.slane %v192_v36, 4  ;;  %v290_v26 = vshll.u32 %v4225_v17, 16  ;;  %vm323_vm13 = vcmask 1044484   ;;  %v327_v43 = vrot.slane %v4212_v24, 7 }
  0x18   :  { %v330_v44 = vrot.slane %v4225_v17, 7  ;;  %vm5289_vm14 = vsmask.f32 256  ;;  %v4257_v45 = vpack.c.bf16 %v56_v32, %v56_v32  ;;  %v4259_v46 = vor.u32 %v282_v40, %v279_v39  ;;  %vm4307_vm1 = vmor %vm322_vm12, %vm323_vm13 }
  0x19   :  { %vm353_vm15 = vsmask.f32 4368  ;;  %v289_v51 = vrot.slane %v287_v42, 6  ;;  %v4273_v53 = vrot.slane %v277_v30, 7  ;;  %v292_v55 = vrot.slane %v290_v26, 7 }
  0x1a   :  { %127 = vrot.lane.b32.xlu0 %v117_v34, %s3997_s20  ;;  %393 = vst.msk [vmem:[#allocation2 + $0x34] sm:$0xf] %vm75_vm9, %v4257_v45  ;;  %v4280_v56 = vrot.slane %v327_v43, 4  ;;  %v357_v57 = vrot.slane %v4245_v37, 4  ;;  %v4293_v61 = vrot.slane %v287_v42, 7  ;;  %v297_v63 = vshrl.u32 %v4257_v45, 16  ;;  %vm4349_vm11 = vmor %vm5289_vm14, %vm353_vm15 }
  0x1b   :  { %335 = vrot.lane.b32.xlu1 %v325_v19, %s3996_s23  ;;  %v284_v0 = vsel %vm4269_vm0, %v275_v38, %v4259_v46  ;;  %v285_v1 = vrot.slane %v4259_v46, 4  ;;  %v300_v2 = vshll.u32 %v4257_v45, 16  ;;  %v4303_v6 = vrot.slane %v330_v44, 4  ;;  %v417_v34 = vld [vmem:[%s5273_s1 + $0x80] sm:$0xff] }
  0x1c   :  { %v361_v12 = vrot.slane %v4273_v53, 4  ;;  %v3262_v13 = vcombine.low %v411_v47, %v412_v49  ;;  %vm79_vm3 = vcmask 254976   ;;  %vm213_vm4 = vcmask 1041408   ;;  %v3744_v47 = vld [vmem:[%s5273_s1 + $0x84] ss:$8 sps:$4 sm:$0xff]  }
  0x1d   :  { %v193_v11 = vsel %vm4157_vm8, %v189_v28, %v192_v36  ;;  %80 = vst.msk [vmem:[#allocation2 + $0x18] sm:$0x3] %vm79_vm3, %v4103_v8  ;;  %vm214_vm5 = vcmask 1045508   ;;  %v220_v14 = vrot.slane %v218_v22, 4  ;;  %v299_v19 = vrot.slane %v297_v63, 6 }
  0x1e   :  { %305 = vrot.lane.b32.xlu0 %v274_v29, %s3997_s20  ;;  %590 = vmatpush1.bf16.msra.mxu0 %v3262_v13  ;;  %vm4333_vm6 = vmor %vm213_vm4, %vm214_vm5  ;;  %v221_v21 = vrot.slane %v4094_v5, 6  ;;  %v224_v23 = vrot.slane %v4103_v8, 6  ;;  %v293_v28 = vor.u32 %v292_v55, %v289_v51  ;;  %v328_v18 = vsel %vm4307_vm1, %v4216_v27, %v327_v43  ;;  %v419_v51 = vld [vmem:[%s5273_s1 + $0x90] sm:$0xff]  ;;  %v420_v55 = vld [vmem:[%s5273_s1 + $0x98] sm:$0xff] }
  0x1f   :  { %201 = vrot.lane.b32.xlu1 %v194_v41, %s3998_s16  ;;  %v359_v29 = vor.u32 %v4273_v53, %v280_v31  ;;  %v302_v30 = vrot.slane %v300_v2, 7  ;;  %591 = vmatprep.subr.bf16.mxu0 %v3740_v60  ;;  %v356_v27 = vor.u32 %v4245_v37, %v271_v62  ;;  %v245_v36 = vrot.slane %v4165_v54, 6  ;;  %v418_v37 = vld [vmem:[%s5273_s1 + $0x88] sm:$0xff] }
  0x20   :  { %v222_v8 = vsel %vm4333_vm6, %v220_v14, %v221_v21  ;;  %v223_v32 = vrot.slane %v221_v21, 4  ;;  %v226_v33 = vrot.slane %v224_v23, 4  ;;  %v295_v31 = vrot.slane %v293_v28, 4  ;;  %v3760_v53 = vld [vmem:[%s5275_s3 + $0x8] sm:$0xff]   ;;  %v3770_v14 = vld [vmem:[%s5275_s3 + $0x30] sm:$0xff]  }
  0x21   :  { %232 = vst.msk [vmem:[#allocation2 + $0xc] sm:$0xf] %vm75_vm9, %v222_v8  ;;  %vm259_vm12 = vcmask 257026   ;;  %v333_v38 = vrot.slane %v4257_v45, 7  ;;  %v3266_v62 = vcombine.low %v415_v15, %v416_v16  ;;  %v219_v40 = vsel %vm4333_vm6, %v3239_v10, %v218_v22  ;;  %v3772_v15 = vld [vmem:[%s5275_s3 + $0x38] sm:$0xff]   ;;  %v3774_v16 = vld [vmem:[%s5275_s3 + $0x40] sm:$0xff]  }
  0x22   :  { %161 = vrot.lane.b32.xlu0 %v4214_v25, %s3996_s23  ;;  %v3264_v25 = vcombine.low %v413_v58, %v414_v59  ;;  %v225_v39 = vsel %vm4333_vm6, %v223_v32, %v224_v23  ;;  %234 = vst.msk [vmem:[#allocation2 + $0x1c] sm:$0x3] %vm79_vm3, %v226_v33  ;;  %v360_v41 = vsel %vm4349_vm11, %v357_v57, %v359_v29  ;;  %v366_v43 = vrot.slane %v297_v63, 7 }
  0x23   :  { %307 = vrot.lane.b32.xlu1 %v284_v0, %s3997_s20  ;;  %390 = vst.msk [vmem:[#allocation2 + $0x1c] sm:$0xc] %vm259_vm12, %v4165_v54  ;;  %v303_v42 = vor.u32 %v302_v30, %v299_v19  ;;  %v246_v54 = vrot.slane %v245_v36, 4  ;;  %260 = vst.msk [vmem:[#allocation2 + $0x18] sm:$0xc] %vm259_vm12, %v245_v36  ;;  %v365_v3 = vrot.slane %v4293_v61, 4  ;;  %v294_v49 = vsel %vm4269_vm0, %v285_v1, %v293_v28 }
  0x24   :  { %592 = vmatpush1.bf16.msra.mxu0 %v3264_v25  ;;  %233 = vst.msk [vmem:[#allocation2 + $0x14] sm:$0xf] %vm75_vm9, %v225_v39  ;;  %231 = vst.msk [vmem:[#allocation2 + $0x4] sm:$0xf] %vm75_vm9, %v219_v40  ;;  %v247_v4 = vrot.slane %v4212_v24, 6  ;;  %v250_v10 = vrot.slane %v4225_v17, 6  ;;  %v3268_v57 = vcombine.low %v417_v34, %v418_v37  ;;  %v367_v63 = vor.u32 %v366_v43, %v300_v2 }
  0x25   :  { %593 = vmatprep.subr.bf16.mxu0 %v3742_v52  ;;  %v253_v22 = vrot.slane %v4257_v45, 6  ;;  %v3746_v24 = vld [vmem:[%s5273_s1 + $0x94] ss:$8 sps:$4 sm:$0xff]   ;;  %v304_v60 = vsel %vm4269_vm0, %v295_v31, %v303_v42  ;;  %v331_v45 = vsel %vm4307_vm1, %v4280_v56, %v330_v44  ;;  %v363_v50 = vor.u32 %v4293_v61, %v290_v26  ;;  %v3758_v26 = vld [vmem:[%s5275_s3] sm:$0xff]   ;;  %v3776_v52 = vld [vmem:[%s5275_s3 + $0x48] sm:$0xff]  }
  0x26   :  { %199 = vrot.lane.b32.xlu0 %v193_v11, %s3998_s16  ;;  %v248_v46 = vsel %vm4333_vm6, %v246_v54, %v247_v4  ;;  %v249_v58 = vrot.slane %v247_v4, 4  ;;  %v252_v59 = vrot.slane %v250_v10, 4  ;;  %v3270_v2 = vcombine.low %v419_v51, %v420_v55  ;;  %v3762_v56 = vld [vmem:[%s5275_s3 + $0x10] sm:$0xff]   ;;  %v3764_v61 = vld [vmem:[%s5275_s3 + $0x18] sm:$0xff]  }
  0x27   :  { %337 = vrot.lane.b32.xlu1 %v328_v18, %s3996_s23  ;;  %261 = vst.msk [vmem:[#allocation2 + $0x20] sm:$0xf] %vm75_vm9, %v248_v46  ;;  %v368_v13 = vsel %vm4349_vm11, %v365_v3, %v367_v63  ;;  %v364_v11 = vsel %vm4349_vm11, %v361_v12, %v363_v50  ;;  %v334_v17 = vsel %vm4307_vm1, %v4303_v6, %v333_v38  ;;  %v3999_v44 = vmov 0   ;;  %v3766_v6 = vld [vmem:[%s5275_s3 + $0x20] sm:$0xff]   ;;  %v3768_v12 = vld [vmem:[%s5275_s3 + $0x28] sm:$0xff]   ;;  %v3778_v19 = vld [vmem:[%s5275_s3 + $0x50] sm:$0xff]  }
  0x28   :  { %594 = vmatpush1.bf16.msra.mxu0 %v3266_v62  ;;  %v251_v0 = vsel %vm4333_vm6, %v249_v58, %v250_v10  ;;  %v254_v1 = vsel %vm4333_vm6, %v252_v59, %v253_v22  ;;  %797 = vmatprep.subr.bf16.mxu1 %v3999_v44  ;;  %vm139_vm13 = vcmask 517376   ;;  %vm167_vm15 = vcmask 781824  }
  0x29   :  { %595 = vmatprep.subr.bf16.mxu0 %v3744_v47  ;;  %262 = vst.msk [vmem:[#allocation2 + $0x28] sm:$0xf] %vm75_vm9, %v251_v0  ;;  %263 = vst.msk [vmem:[#allocation2 + $0x30] sm:$0xf] %vm75_vm9, %v254_v1  ;;  %798 = vmatpush1.bf16.msra.mxu1 %v3758_v26  ;;  %vm135_vm9 = vcmask 519424  }
  0x2a   :  { %369 = vrot.lane.b32.xlu0 %v356_v27, %s3998_s16  ;;  %799 = vmatprep.subr.bf16.mxu1 %v3999_v44 }
  0x2b   :  { %371 = vrot.lane.b32.xlu1 %v360_v41, %s3998_s16 }
  0x2c   :  { %596 = vmatpush1.bf16.msra.mxu0 %v3268_v57 }
  0x2d   :  { %597 = vmatprep.subr.bf16.mxu0 %v3746_v24  ;;  %800 = vmatpush1.bf16.msra.mxu1 %v3760_v53 }
  0x2e   :  { %309 = vrot.lane.b32.xlu0 %v294_v49, %s3997_s20  ;;  %801 = vmatprep.subr.bf16.mxu1 %v3999_v44 }
  0x2f   :  { %311 = vrot.lane.b32.xlu1 %v304_v60, %s3997_s20 }
  0x30   :  { %598 = vmatpush1.bf16.msra.mxu0 %v3270_v2 }
  0x31   :  { %974 = vmatprep.subr.bf16.mxu0 %v3999_v44  ;;  %802 = vmatpush1.bf16.msra.mxu1 %v3762_v56 }
  0x32   :  { %339 = vrot.lane.b32.xlu0 %v331_v45, %s3996_s23  ;;  %803 = vmatprep.subr.bf16.mxu1 %v3999_v44 }
  0x33   :  { %375 = vrot.lane.b32.xlu1 %v368_v13, %s3998_s16 }
  0x35   :  { %804 = vmatpush1.bf16.msra.mxu1 %v3764_v61 }
  0x36   :  { %373 = vrot.lane.b32.xlu0 %v364_v11, %s3998_s16  ;;  %805 = vmatprep.subr.bf16.mxu1 %v3999_v44 }
  0x39   :  { %806 = vmatpush1.bf16.msra.mxu1 %v3766_v6 }
  0x3a   :  { %341 = vrot.lane.b32.xlu0 %v334_v17, %s3996_s23  ;;  %807 = vmatprep.subr.bf16.mxu1 %v3999_v44 }
  0x3d   :  { %808 = vmatpush1.bf16.msra.mxu1 %v3768_v12 }
  0x3e   :  { %809 = vmatprep.subr.bf16.mxu1 %v3999_v44 }
  0x41   :  { %810 = vmatpush1.bf16.msra.mxu1 %v3770_v14 }
  0x42   :  { %811 = vmatprep.subr.bf16.mxu1 %v3999_v44 }
  0x45   :  { %812 = vmatpush1.bf16.msra.mxu1 %v3772_v15 }
  0x46   :  { %813 = vmatprep.subr.bf16.mxu1 %v3999_v44 }
  0x49   :  { %814 = vmatpush1.bf16.msra.mxu1 %v3774_v16 }
  0x4a   :  { %815 = vmatprep.subr.bf16.mxu1 %v3999_v44 }
  0x4d   :  { %816 = vmatpush1.bf16.msra.mxu1 %v3776_v52 }
  0x4e   :  { %817 = vmatprep.subr.bf16.mxu1 %v3999_v44 }
  0x51   :  { %818 = vmatpush1.bf16.msra.mxu1 %v3778_v19 }
  0x52   :  { %819 = vmatprep.subr.bf16.mxu1 %v3999_v44 }
  0x79   :  { %v156_v21 = vpop.permute.xlu1 %155 }
  0x7d   :  { %v158_v23 = vpop.permute.xlu1 %157 }
  0x7e   :  { %19 = vsyncpa [#allocation6], 0  ;;  %vm207_vm0 = vcmask 1044224   ;;  %vm317_vm3 = vcmask 519426   ;;  %vm5290_vm5 = vcmask 261120   ;;  %vm347_vm12 = vcmask 781826  }
  0x7f   :  { %v3759_v27 = vld [vmem:[%s5275_s3 + $0x70] sm:$0xff]   ;;  %v3750_v36 = vld [vmem:[#allocation2 + $0x4] ss:$8 sps:$4 sm:$0xff]   ;;  %vm211_vm10 = vcmask 1042176   ;;  %v3761_v62 = vld [vmem:[%s5275_s3 + $0x78] sm:$0xff]   ;;  %v423_v14 = vlaneseq  ;;  %s4002_s30 = smov 112  }
  0x80   :  { %v124_v25 = vpop.permute.xlu0 %123  ;;  %3272 = vmatprep.mubr.msk.bf16.mxu0 %vm5290_vm5, %v3750_v36  ;;  %v3763_v41 = vld [vmem:[%s5275_s3 + $0x80] sm:$0xff]   ;;  %v3765_v47 = vld [vmem:[%s5275_s3 + $0x88] sm:$0xff]   ;;  %v3767_v4 = vld [vmem:[%s5275_s3 + $0x90] sm:$0xff]   ;;  %s4003_s19 = smov 80   ;;  %s4005_s28 = smov [#allocation5]  }
  0x81   :  { %136 = vst.msk [vmem:[#allocation2] sm:$0xf] %vm135_vm9, %v124_v25  ;;  %v130_v28 = vpop.permute.xlu1 %129  ;;  %v3769_v22 = vld [vmem:[%s5275_s3 + $0x98] sm:$0xff]   ;;  %v3771_v58 = vld [vmem:[%s5275_s3 + $0xa0] sm:$0xff]   ;;  %v3773_v63 = vld [vmem:[%s5275_s3 + $0xa8] sm:$0xff]   ;;  %v4578_v15 = vshrl.u32 %v423_v14, 7 }
  0x82   :  { %140 = vst.msk [vmem:[#allocation2 + $0x18] sm:$0x3] %vm139_vm13, %v130_v28  ;;  %vm171_vm13 = vcmask 779776   ;;  %v3751_v24 = vld [vmem:[#allocation2 + $0x14] ss:$8 sps:$4 sm:$0xff]   ;;  %v3779_v17 = vld [vmem:[%s5275_s3 + $0xc0] sm:$0xff]  }
  0x83   :  { %168 = vst.msk [vmem:[#allocation2] sm:$0xf] %vm167_vm15, %v156_v21  ;;  %v3775_v0 = vld [vmem:[%s5275_s3 + $0xb0] sm:$0xff]   ;;  %v3753_v1 = vld [vmem:[#allocation2 + $0x24] ss:$8 sps:$4 sm:$0xff]   ;;  %v3777_v50 = vld [vmem:[%s5275_s3 + $0xb8] sm:$0xff]  }
  0x84   :  { %v126_v18 = vpop.permute.xlu0 %125  ;;  %v3780_v26 = vld [vmem:[%s5275_s3 + $0x58] sm:$0xff]   ;;  %v3781_v53 = vld [vmem:[%s5275_s3 + $0xc8] sm:$0xff]   ;;  %v3782_v56 = vld [vmem:[%s5275_s3 + $0x60] sm:$0xff]   ;;  %v425_v16 = vsub.s32 0, %v4578_v15  ;;  %v429_v19 = vsub.s32 1, %v4578_v15  ;;  %s3226_s29 = sshll.u32 %s4005_s28, 4  ;;  %s3227_s29 = int_to_ptr.vmem [resolvable:$true] %s3226_s29 }
  0x85   :  { %137 = vst.msk [vmem:[#allocation2 + $0x8] sm:$0xf] %vm135_vm9, %v126_v18  ;;  %v198_v29 = vpop.permute.xlu1 %197  ;;  %820 = vmatpush1.bf16.msra.mxu1 %v3780_v26  ;;  %v3783_v61 = vld [vmem:[%s5275_s3 + $0xd0] sm:$0xff]   ;;  %v3784_v6 = vld [vmem:[%s5275_s3 + $0x68] sm:$0xff]   ;;  %v3785_v12 = vld [vmem:[%s5275_s3 + $0xd8] sm:$0xff]   ;;  %p3977_p1 = scmp.lt.s32.totalorder %s3227_s29, %s3227_s29 }
  0x86   :  { %169 = vst.msk [vmem:[#allocation2 + $0x8] sm:$0xf] %vm167_vm15, %v158_v23  ;;  %821 = vmatprep.subr.bf16.mxu1 %v3999_v44  ;;  %v421_v52 = vld [vmem:[%s5274_s2] sm:$0x3] }
  0x87   :  { %209 = vst.msk [vmem:[#allocation2 + $0x8] sm:$0xf] %vm207_vm0, %v198_v29  ;;  %v426_v21 = vrot.slane %v421_v52, %v425_v16  ;;  %v430_v23 = vrot.slane %v421_v52, %v429_v19 }
  0x88   :  { %v196_v30 = vpop.permute.xlu0 %195 }
  0x89   :  { %208 = vst.msk [vmem:[#allocation2] sm:$0xf] %vm207_vm0, %v196_v30  ;;  %v160_v8 = vpop.permute.xlu1 %159  ;;  %822 = vmatpush1.bf16.msra.mxu1 %v3782_v56 }
  0x8a   :  { %823 = vmatprep.subr.bf16.mxu1 %v3999_v44 }
  0x8c   :  { %v128_v32 = vpop.permute.xlu0 %127 }
  0x8d   :  { %138 = vst.msk [vmem:[#allocation2 + $0x10] sm:$0xf] %vm135_vm9, %v128_v32  ;;  %v336_v33 = vpop.permute.xlu1 %335  ;;  %824 = vmatpush1.bf16.msra.mxu1 %v3784_v6 }
  0x8e   :  { %170 = vst.msk [vmem:[#allocation2 + $0x10] sm:$0xf] %vm167_vm15, %v160_v8 }
  0x90   :  { %v306_v31 = vpop.permute.xlu0 %305  ;;  %v3748_v34 = vld [vmem:[#allocation2] ss:$8 sps:$4 sm:$0xff]  }
  0x91   :  { %318 = vst.msk [vmem:[#allocation2 + $0x18] sm:$0xc] %vm317_vm3, %v306_v31  ;;  %v202_v38 = vpop.permute.xlu1 %201  ;;  %612 = vmatmul.mubr.bf16.vlgmr.msra.gmra.mrb[0].mxu0 %v3748_v34  ;;  %vm381_vm3 = vcmask 1044226  }
  0x92   :  { %348 = vst.msk [vmem:[#allocation2 + $0x18] sm:$0xc] %vm347_vm12, %v336_v33  ;;  %975 = vmatpush1.bf16.msra.mxu0 %v3759_v27  ;;  %3273 = vmatprep.mubr.msk.bf16.mxu0 %vm5290_vm5, %v3751_v24  ;;  %vm1063_vm12 = vcmask 1045504  }
  0x93   :  { %976 = vmatprep.subr.bf16.mxu0 %v3999_v44 }
  0x94   :  { %v162_v39 = vpop.permute.xlu0 %161 }
  0x95   :  { %172 = vst.msk [vmem:[#allocation2 + $0x18] sm:$0x3] %vm171_vm13, %v162_v39  ;;  %v308_v37 = vpop.permute.xlu1 %307  ;;  %vm1059_vm13 = vcmask 228352  }
  0x96   :  { %212 = vst.msk [vmem:[#allocation2 + $0x18] sm:$0x3] %vm211_vm10, %v202_v38  ;;  %977 = vmatpush1.bf16.msra.mxu0 %v3761_v62 }
  0x97   :  { %319 = vst.msk [vmem:[#allocation2 + $0x20] sm:$0xf] %vm135_vm9, %v308_v37  ;;  %978 = vmatprep.subr.bf16.mxu0 %v3999_v44 }
  0x98   :  { %v200_v40 = vpop.permute.xlu0 %199 }
  0x99   :  { %210 = vst.msk [vmem:[#allocation2 + $0x10] sm:$0xf] %vm207_vm0, %v200_v40  ;;  %v338_v42 = vpop.permute.xlu1 %337 }
  0x9a   :  { %349 = vst.msk [vmem:[#allocation2 + $0x20] sm:$0xf] %vm167_vm15, %v338_v42  ;;  %979 = vmatpush1.bf16.msra.mxu0 %v3763_v41 }
  0x9b   :  { %980 = vmatprep.subr.bf16.mxu0 %v3999_v44 }
  0x9c   :  { %v370_v43 = vpop.permute.xlu0 %369 }
  0x9d   :  { %382 = vst.msk [vmem:[#allocation2 + $0x18] sm:$0xc] %vm381_vm3, %v370_v43  ;;  %v372_v54 = vpop.permute.xlu1 %371  ;;  %vm1169_vm3 = vcmask 909312  }
  0x9e   :  { %383 = vst.msk [vmem:[#allocation2 + $0x20] sm:$0xf] %vm207_vm0, %v372_v54  ;;  %981 = vmatpush1.bf16.msra.mxu0 %v3765_v47 }
  0x9f   :  { %982 = vmatprep.subr.bf16.mxu0 %v3999_v44 }
  0xa0   :  { %v310_v3 = vpop.permute.xlu0 %309  ;;  %v396_v51 = vld [vmem:[#allocation2 + $0x10] sm:$0xff] }
  0xa1   :  { %320 = vst.msk [vmem:[#allocation2 + $0x28] sm:$0xf] %vm135_vm9, %v310_v3  ;;  %v312_v10 = vpop.permute.xlu1 %311 }
  0xa2   :  { %321 = vst.msk [vmem:[#allocation2 + $0x30] sm:$0xf] %vm135_vm9, %v312_v10  ;;  %983 = vmatpush1.bf16.msra.mxu0 %v3767_v4  ;;  %vm784_vm9 = vcmask 785408  }
  0xa3   :  { %984 = vmatprep.subr.bf16.mxu0 %v3999_v44 }
  0xa4   :  { %v340_v49 = vpop.permute.xlu0 %339  ;;  %v397_v55 = vld [vmem:[#allocation2 + $0x18] sm:$0xff] }
  0xa5   :  { %350 = vst.msk [vmem:[#allocation2 + $0x28] sm:$0xf] %vm167_vm15, %v340_v49  ;;  %v3246_v57 = vcombine.low %v396_v51, %v397_v55  ;;  %v376_v59 = vpop.permute.xlu1 %375 }
  0xa6   :  { %985 = vmatpush1.bf16.msra.mxu0 %v3769_v22 }
  0xa7   :  { %622 = vmatmul.mubr.bf16.gmra.mrb[4].mxu0 %v3246_v57  ;;  %986 = vmatprep.subr.bf16.mxu0 %v3999_v44 }
  0xa8   :  { %v374_v46 = vpop.permute.xlu0 %373  ;;  %3274 = vmatprep.mubr.msk.bf16.mxu0 %vm5290_vm5, %v3753_v1 }
  0xa9   :  { %384 = vst.msk [vmem:[#allocation2 + $0x28] sm:$0xf] %vm207_vm0, %v374_v46 }
  0xaa   :  { %987 = vmatpush1.bf16.msra.mxu0 %v3771_v58 }
  0xab   :  { %988 = vmatprep.subr.bf16.mxu0 %v3999_v44 }
  0xac   :  { %v342_v60 = vpop.permute.xlu0 %341 }
  0xad   :  { %351 = vst.msk [vmem:[#allocation2 + $0x30] sm:$0xf] %vm167_vm15, %v342_v60  ;;  %vm5292_vm15 = vmmov 0  }
  0xae   :  { %385 = vst.msk [vmem:[#allocation2 + $0x30] sm:$0xf] %vm207_vm0, %v376_v59  ;;  %989 = vmatpush1.bf16.msra.mxu0 %v3773_v63 }
  0xaf   :  { %990 = vmatprep.subr.bf16.mxu0 %v3999_v44 }
  0xb0   :  { %v3755_v45 = vld [vmem:[#allocation2 + $0x20] ss:$8 sps:$4 sm:$0xff]  }
  0xb1   :  { %632 = vmatmul.mubr.bf16.gmra.mrb[8].mxu0 %v3755_v45 }
  0xb2   :  { %991 = vmatpush1.bf16.msra.mxu0 %v3775_v0 }
  0xb3   :  { %992 = vmatprep.subr.bf16.mxu0 %v3999_v44 }
  0xb5   :  { %v400_v2 = vld [vmem:[#allocation2 + $0x30] sm:$0xff] }
  0xb6   :  { %v3251_v13 = vcombine.high %v400_v2, %v400_v2  ;;  %v3250_v11 = vcombine.low %v400_v2, %v400_v2  ;;  %993 = vmatpush1.bf16.msra.mxu0 %v3777_v50 }
  0xb7   :  { %994 = vmatprep.subr.bf16.mxu0 %v3999_v44 }
  0xb8   :  { %3275 = vmatprep.mubr.msk.bf16.mxu0 %vm5290_vm5, %v3251_v13  ;;  %vm1444_vm5 = vcmask 652292  }
  0xb9   :  { %642 = vmatmul.mubr.bf16.gmra.mrb[12].mxu0 %v3250_v11 }
  0xba   :  { %995 = vmatpush1.bf16.msra.mxu0 %v3779_v17 }
  0xbb   :  { %996 = vmatprep.subr.bf16.mxu0 %v3999_v44 }
  0xbe   :  { %997 = vmatpush1.bf16.msra.mxu0 %v3781_v53 }
  0xbf   :  { %998 = vmatprep.subr.bf16.mxu0 %v3999_v44 }
  0xc2   :  { %999 = vmatpush1.bf16.msra.mxu0 %v3783_v61 }
  0xc3   :  { %1000 = vmatprep.subr.bf16.mxu0 %v3999_v44 }
  0xc6   :  { %1001 = vmatpush1.bf16.msra.mxu0 %v3785_v12 }
 0x164   :  { %v613_v25 = vpop.f32.mrb[0].mxu0 }
 0x165   :  { %v614_v28 = vadd.f32 %v613_v25, %v426_v21  ;;  %v615_v18 = vpop.f32.mrb[1].mxu0 }
 0x166   :  { %v616_v29 = vadd.f32 %v615_v18, %v430_v23  ;;  %v617_v30 = vpop.f32.mrb[2].mxu0 }
 0x167   :  { %v618_v8 = vadd.f32 %v617_v30, %v426_v21  ;;  %v619_v32 = vpop.f32.mrb[3].mxu0  ;;  %v650_v27 = vmax.f32 %v614_v28, 0.0 }
 0x168   :  { %v620_v33 = vadd.f32 %v619_v32, %v430_v23  ;;  %v651_v34 = vmax.f32 %v616_v29, 0.0 }
 0x169   :  { %v652_v31 = vmax.f32 %v618_v8, 0.0 }
 0x16a   :  { %v653_v36 = vmax.f32 %v620_v33, 0.0 }
 0x16b   :  { %v664_v38 = vpack.c.bf16 %v652_v31, %v650_v27 }
 0x16c   :  { %v665_v39 = vpack.c.bf16 %v653_v36, %v651_v34 }
 0x16e   :  { %3290 = vmatprep.mubr.msk.bf16.mxu1 %vm784_vm9, %v665_v39  ;;  %3336 = vmatprep.mubr.msk.bf16.mxu0 %vm784_vm9, %v665_v39 }
 0x16f   :  { %830 = vmatmul.mubr.bf16.vlgmr.msra.gmra.mrb[0].mxu1 %v664_v38  ;;  %1007 = vmatmul.mubr.bf16.vlgmr.msra.gmra.mrb[16].mxu0 %v664_v38 }
 0x17a   :  { %v623_v62 = vpop.f32.mrb[4].mxu0 }
 0x17b   :  { %v624_v37 = vadd.f32 %v623_v62, %v426_v21  ;;  %v625_v40 = vpop.f32.mrb[5].mxu0 }
 0x17c   :  { %v626_v41 = vadd.f32 %v625_v40, %v430_v23  ;;  %v627_v42 = vpop.f32.mrb[6].mxu0 }
 0x17d   :  { %v628_v43 = vadd.f32 %v627_v42, %v426_v21  ;;  %v629_v47 = vpop.f32.mrb[7].mxu0  ;;  %v654_v3 = vmax.f32 %v624_v37, 0.0 }
 0x17e   :  { %v630_v54 = vadd.f32 %v629_v47, %v430_v23  ;;  %v655_v10 = vmax.f32 %v626_v41, 0.0 }
 0x17f   :  { %v656_v4 = vmax.f32 %v628_v43, 0.0 }
 0x180   :  { %v657_v22 = vmax.f32 %v630_v54, 0.0 }
 0x181   :  { %v666_v49 = vpack.c.bf16 %v656_v4, %v654_v3  ;;  %v3786_v3 = vld [vmem:[%s5276_s4] sm:$0x7f]  }
 0x182   :  { %v667_v51 = vpack.c.bf16 %v657_v22, %v655_v10 }
 0x184   :  { %3291 = vmatprep.mubr.msk.bf16.mxu1 %vm784_vm9, %v667_v51  ;;  %3337 = vmatprep.mubr.msk.bf16.mxu0 %vm784_vm9, %v667_v51  ;;  %v633_v55 = vpop.f32.mrb[8].mxu0 }
 0x185   :  { %838 = vmatmul.mubr.bf16.gmra.mrb[4].mxu1 %v666_v49  ;;  %1015 = vmatmul.mubr.bf16.gmra.mrb[20].mxu0 %v666_v49  ;;  %v634_v24 = vadd.f32 %v633_v55, %v426_v21  ;;  %v635_v57 = vpop.f32.mrb[9].mxu0 }
 0x186   :  { %v636_v46 = vadd.f32 %v635_v57, %v430_v23  ;;  %v637_v58 = vpop.f32.mrb[10].mxu0 }
 0x187   :  { %v638_v59 = vadd.f32 %v637_v58, %v426_v21  ;;  %v639_v60 = vpop.f32.mrb[11].mxu0  ;;  %v658_v0 = vmax.f32 %v634_v24, 0.0 }
 0x188   :  { %v640_v63 = vadd.f32 %v639_v60, %v430_v23  ;;  %v659_v45 = vmax.f32 %v636_v46, 0.0 }
 0x189   :  { %v660_v1 = vmax.f32 %v638_v59, 0.0  ;;  %v3787_v59 = vld [vmem:[%s5276_s4 + $0x8] sm:$0x7f]  }
 0x18a   :  { %v661_v50 = vmax.f32 %v640_v63, 0.0 }
 0x18b   :  { %v668_v2 = vpack.c.bf16 %v660_v1, %v658_v0 }
 0x18c   :  { %v669_v13 = vpack.c.bf16 %v661_v50, %v659_v45  ;;  %v643_v11 = vpop.f32.mrb[12].mxu0 }
 0x18d   :  { %v644_v17 = vadd.f32 %v643_v11, %v426_v21  ;;  %v645_v26 = vpop.f32.mrb[13].mxu0  ;;  %v4000_v21 = vmov 0.0  }
 0x18e   :  { %3292 = vmatprep.mubr.msk.bf16.mxu1 %vm784_vm9, %v669_v13  ;;  %3338 = vmatprep.mubr.msk.bf16.mxu0 %vm784_vm9, %v669_v13  ;;  %v646_v53 = vadd.f32 %v645_v26, %v430_v23  ;;  %v647_v56 = vpop.f32.mrb[14].mxu0 }
 0x18f   :  { %846 = vmatmul.mubr.bf16.gmra.mrb[8].mxu1 %v668_v2  ;;  %1023 = vmatmul.mubr.bf16.gmra.mrb[24].mxu0 %v668_v2  ;;  %v648_v61 = vpop.f32.mrb[15].mxu0  ;;  %v662_v12 = vmax.f32 %v644_v17, 0.0 }
 0x190   :  { %v663_v6 = vmax.f32 %v646_v53, 0.0  ;;  %3619 = vmatprep.subr.bf16.mxu1 %v4000_v21 }
 0x191   :  { %v670_v52 = vpack.c.bf16 %v662_v12, %v662_v12 }
 0x192   :  { %v671_v14 = vpack.c.bf16 %v663_v6, %v663_v6 }
 0x194   :  { %3293 = vmatprep.mubr.msk.bf16.mxu1 %vm784_vm9, %v671_v14  ;;  %3339 = vmatprep.mubr.msk.bf16.mxu0 %vm784_vm9, %v671_v14 }
 0x197   :  { %854 = vmatmul.mubr.bf16.gmra.mrb[12].mxu1 %v670_v52  ;;  %1031 = vmatmul.mubr.bf16.gmra.mrb[28].mxu0 %v670_v52  ;;  %v3788_v52 = vld [vmem:[%s5277_s5] ss:$8 sps:$4 sm:$0xff]  }
 0x198   :  { %3623 = vmatprep.mubr.msk.bf16.mxu1 %vm5292_vm15, %v4000_v21 }
 0x242   :  { %v831_v23 = vpop.f32.mrb[0].mxu1  ;;  %v1008_v25 = vpop.f32.mrb[16].mxu0 }
 0x243   :  { %v1038_v28 = vmax.f32 %v831_v23, %v1008_v25  ;;  %v833_v18 = vpop.f32.mrb[1].mxu1  ;;  %v1010_v29 = vpop.f32.mrb[17].mxu0  ;;  %v3790_v23 = vld [vmem:[%s5277_s5 + $0x4] ss:$8 sps:$4 sm:$0xff]   ;;  %v3793_v25 = vld [vmem:[%s5277_s5 + $0x14] ss:$8 sps:$4 sm:$0xff]  }
 0x244   :  { %v834_v30 = vpop.f32.mrb[2].mxu1  ;;  %v1011_v8 = vpop.f32.mrb[18].mxu0  ;;  %1987 = vmatprep.subr.bf16.mxu0 %v3790_v23  ;;  %v3796_v18 = vld [vmem:[%s5277_s5 + $0x24] ss:$8 sps:$4 sm:$0xff]   ;;  %v3794_v29 = vld [vmem:[%s5277_s5 + $0x20] ss:$8 sps:$4 sm:$0xff]  }
 0x245   :  { %v1039_v32 = vmax.f32 %v834_v30, %v1011_v8  ;;  %v836_v33 = vpop.f32.mrb[3].mxu1  ;;  %v1013_v27 = vpop.f32.mrb[19].mxu0  ;;  %1988 = vmatpush1.bf16.msra.mxu0 %v3788_v52  ;;  %v3799_v30 = vld [vmem:[%s5277_s5 + $0x34] ss:$8 sps:$4 sm:$0xff]   ;;  %v3797_v8 = vld [vmem:[%s5277_s5 + $0x30] ss:$8 sps:$4 sm:$0xff]  }
 0x246   :  { %1989 = vmatprep.subr.bf16.mxu0 %v3793_v25  ;;  %v3800_v33 = vld [vmem:[%s5277_s5 + $0x40] ss:$8 sps:$4 sm:$0xff]   ;;  %v3805_v27 = vld [vmem:[%s5277_s5 + $0x54] ss:$8 sps:$4 sm:$0xff]  }
 0x247   :  { %v1045_v31 = vpack.c.bf16 %v1039_v32, %v1038_v28  ;;  %v3791_v28 = vld [vmem:[%s5277_s5 + $0x10] ss:$8 sps:$4 sm:$0xff]   ;;  %v3802_v32 = vld [vmem:[%s5277_s5 + $0x44] ss:$8 sps:$4 sm:$0xff]  }
 0x249   :  { %3620 = vmatpush3.bf16.msra.mxu1 %v1045_v31  ;;  %1990 = vmatpush1.bf16.msra.mxu0 %v3791_v28 }
 0x24a   :  { %3621 = vmatprep.subr.bf16.mxu1 %v4000_v21  ;;  %1991 = vmatprep.subr.bf16.mxu0 %v3796_v18 }
 0x24d   :  { %1992 = vmatpush1.bf16.msra.mxu0 %v3794_v29 }
 0x24e   :  { %1993 = vmatprep.subr.bf16.mxu0 %v3799_v30 }
 0x251   :  { %1994 = vmatpush1.bf16.msra.mxu0 %v3797_v8 }
 0x252   :  { %1995 = vmatprep.subr.bf16.mxu0 %v3802_v32 }
 0x255   :  { %1996 = vmatpush1.bf16.msra.mxu0 %v3800_v33 }
 0x256   :  { %1997 = vmatprep.subr.bf16.mxu0 %v3805_v27  ;;  %v3821_v27 = vld [vmem:[%s5277_s5 + $0xb0] ss:$8 sps:$4 sm:$0xff]  }
 0x258   :  { %v839_v34 = vpop.f32.mrb[4].mxu1  ;;  %v1016_v36 = vpop.f32.mrb[20].mxu0 }
 0x259   :  { %v1040_v38 = vmax.f32 %v839_v34, %v1016_v36  ;;  %v841_v39 = vpop.f32.mrb[5].mxu1  ;;  %v1018_v62 = vpop.f32.mrb[21].mxu0  ;;  %v3808_v34 = vld [vmem:[%s5277_s5 + $0x64] ss:$8 sps:$4 sm:$0xff]   ;;  %v3806_v36 = vld [vmem:[%s5277_s5 + $0x60] ss:$8 sps:$4 sm:$0xff]  }
 0x25a   :  { %v842_v37 = vpop.f32.mrb[6].mxu1  ;;  %v1019_v40 = vpop.f32.mrb[22].mxu0 }
 0x25b   :  { %v1041_v41 = vmax.f32 %v842_v37, %v1019_v40  ;;  %v844_v42 = vpop.f32.mrb[7].mxu1  ;;  %v1021_v43 = vpop.f32.mrb[23].mxu0  ;;  %v3809_v40 = vld [vmem:[%s5277_s5 + $0x70] ss:$8 sps:$4 sm:$0xff]  }
 0x25d   :  { %v1046_v47 = vpack.c.bf16 %v1041_v41, %v1040_v38  ;;  %v3811_v41 = vld [vmem:[%s5277_s5 + $0x74] ss:$8 sps:$4 sm:$0xff]  }
 0x25f   :  { %v1065_v54 = vsel %vm1063_vm12, %v1046_v47, 0  ;;  %v1287_v63 = vrot.slane %v1046_v47, 6 }
 0x260   :  { %3622 = vmatpush3.bf16.msra.mxu1 %v1065_v54 }
 0x261   :  { %3627 = vmatprep.subr.bf16.mxu1 %v4000_v21 }
 0x262   :  { %v847_v4 = vpop.f32.mrb[8].mxu1  ;;  %v1024_v10 = vpop.f32.mrb[24].mxu0 }
 0x263   :  { %3624 = vmatmul.mubr.msk.bf16.vlgmr.msra.gmra.mrb[16].mxu1 %vm1059_vm13, %v3786_v3  ;;  %v1042_v22 = vmax.f32 %v847_v4, %v1024_v10  ;;  %v849_v49 = vpop.f32.mrb[9].mxu1  ;;  %v1026_v51 = vpop.f32.mrb[25].mxu0 }
 0x264   :  { %3628 = vmatpush3.bf16.msra.mxu1 %v1045_v31  ;;  %3631 = vmatprep.mubr.msk.bf16.mxu1 %vm5292_vm15, %v4000_v21  ;;  %v850_v55 = vpop.f32.mrb[10].mxu1  ;;  %v1027_v24 = vpop.f32.mrb[26].mxu0  ;;  %v3803_v31 = vld [vmem:[%s5277_s5 + $0x50] ss:$8 sps:$4 sm:$0xff]   ;;  %v3812_v49 = vld [vmem:[%s5277_s5 + $0x80] ss:$8 sps:$4 sm:$0xff]  }
 0x265   :  { %3629 = vmatprep.subr.bf16.mxu1 %v4000_v21  ;;  %v1043_v57 = vmax.f32 %v850_v55, %v1027_v24  ;;  %v852_v46 = vpop.f32.mrb[11].mxu1  ;;  %v1029_v58 = vpop.f32.mrb[27].mxu0  ;;  %1998 = vmatpush1.bf16.msra.mxu0 %v3803_v31  ;;  %v3823_v31 = vld [vmem:[%s5277_s5 + $0xb4] ss:$8 sps:$4 sm:$0xff]  }
 0x266   :  { %1999 = vmatprep.subr.bf16.mxu0 %v3808_v34  ;;  %v3815_v58 = vld [vmem:[%s5277_s5 + $0x90] ss:$8 sps:$4 sm:$0xff]  }
 0x267   :  { %v1047_v60 = vpack.c.bf16 %v1043_v57, %v1042_v22  ;;  %v3814_v22 = vld [vmem:[%s5277_s5 + $0x84] ss:$8 sps:$4 sm:$0xff]  }
 0x268   :  { %3630 = vmatpush3.bf16.msra.mxu1 %v1065_v54 }
 0x269   :  { %3635 = vmatprep.subr.bf16.mxu1 %v4000_v21  ;;  %v1288_v0 = vrot.slane %v1047_v60, 6  ;;  %2000 = vmatpush1.bf16.msra.mxu0 %v3806_v36  ;;  %v3826_v36 = vld [vmem:[%s5277_s5 + $0xc4] ss:$8 sps:$4 sm:$0xff]  }
 0x26a   :  { %v855_v1 = vpop.f32.mrb[12].mxu1  ;;  %v1032_v45 = vpop.f32.mrb[28].mxu0  ;;  %2001 = vmatprep.subr.bf16.mxu0 %v3811_v41  ;;  %v3829_v41 = vld [vmem:[%s5277_s5 + $0xd4] ss:$8 sps:$4 sm:$0xff]  }
 0x26b   :  { %3632 = vmatmul.mubr.msk.bf16.vlgmr.msra.gmra.mrb[20].mxu1 %vm1059_vm13, %v3787_v59  ;;  %v1044_v50 = vmax.f32 %v855_v1, %v1032_v45  ;;  %v857_v2 = vpop.f32.mrb[13].mxu1  ;;  %v1034_v13 = vpop.f32.mrb[29].mxu0  ;;  %v1289_v11 = vsel %vm213_vm4, %v1287_v63, %v1288_v0 }
 0x26c   :  { %3639 = vmatprep.mubr.msk.bf16.mxu1 %vm5292_vm15, %v4000_v21  ;;  %3636 = vmatpush3.bf16.msra.mxu1 %v1289_v11  ;;  %v858_v17 = vpop.f32.mrb[14].mxu1  ;;  %v1035_v26 = vpop.f32.mrb[30].mxu0 }
 0x26d   :  { %v1048_v53 = vpack.c.bf16 %v1044_v50, %v1044_v50  ;;  %v859_v56 = vpop.f32.mrb[15].mxu1  ;;  %v1036_v61 = vpop.f32.mrb[31].mxu0  ;;  %3637 = vmatprep.subr.bf16.mxu1 %v4000_v21  ;;  %2002 = vmatpush1.bf16.msra.mxu0 %v3809_v40 }
 0x26e   :  { %2003 = vmatprep.subr.bf16.mxu0 %v3814_v22 }
 0x26f   :  { %v1290_v6 = vrot.slane %v1048_v53, 6 }
 0x271   :  { %v1291_v12 = vsel %vm213_vm4, %v1288_v0, %v1290_v6  ;;  %vm1167_vm4 = vcmask 912384   ;;  %2004 = vmatpush1.bf16.msra.mxu0 %v3812_v49 }
 0x272   :  { %v1294_v14 = vsel %vm1063_vm12, %v1291_v12, 0  ;;  %vm1394_vm12 = vcmask 910336  }
 0x273   :  { %3638 = vmatpush3.bf16.msra.mxu1 %v1294_v14 }
 0x274   :  { %3643 = vmatprep.subr.bf16.mxu1 %v4000_v21 }
 0x276   :  { %3640 = vmatmul.mubr.msk.bf16.vlgmr.msra.gmra.mrb[24].mxu1 %vm1059_vm13, %v3786_v3 }
 0x277   :  { %3644 = vmatpush3.bf16.msra.mxu1 %v1289_v11  ;;  %3647 = vmatprep.mubr.msk.bf16.mxu1 %vm5292_vm15, %v4000_v21  ;;  %v3820_v11 = vld [vmem:[%s5277_s5 + $0xa4] ss:$8 sps:$4 sm:$0xff]   ;;  %vm1467_vm15 = vcmask 523269  }
 0x278   :  { %3645 = vmatprep.subr.bf16.mxu1 %v4000_v21 }
 0x27b   :  { %3646 = vmatpush3.bf16.msra.mxu1 %v1294_v14  ;;  %v3818_v14 = vld [vmem:[%s5277_s5 + $0xa0] ss:$8 sps:$4 sm:$0xff]  }
 0x27c   :  { %2236 = vmatprep.subr.bf16.mxu1 %v3999_v44 }
 0x27e   :  { %3648 = vmatmul.mubr.msk.bf16.vlgmr.msra.gmra.mrb[28].mxu1 %vm1059_vm13, %v3787_v59  ;;  %v3817_v59 = vld [vmem:[%s5277_s5 + $0x94] ss:$8 sps:$4 sm:$0xff]   ;;  %vm1206_vm13 = vcmask 782340  }
 0x27f   :  { %2005 = vmatprep.subr.bf16.mxu0 %v3817_v59  ;;  %v3830_v59 = vld [vmem:[%s5277_s5 + $0xe0] ss:$8 sps:$4 sm:$0xff]  }
 0x280   :  { %2006 = vmatpush1.bf16.msra.mxu0 %v3815_v58 }
 0x281   :  { %2007 = vmatprep.subr.bf16.mxu0 %v3820_v11 }
 0x284   :  { %2008 = vmatpush1.bf16.msra.mxu0 %v3818_v14  ;;  %v3833_v14 = vld [vmem:[%s5277_s5 + $0xf0] ss:$8 sps:$4 sm:$0xff]  }
 0x285   :  { %2009 = vmatprep.subr.bf16.mxu0 %v3823_v31 }
 0x288   :  { %2010 = vmatpush1.bf16.msra.mxu0 %v3821_v27 }
 0x289   :  { %2011 = vmatprep.subr.bf16.mxu0 %v3826_v36  ;;  %v3907_v36 = vld [vmem:[%s5279_s7 + $0x18] sm:$0xff]  }
 0x336   :  { %v1101_v38 = vpop.f32.mrb[16].mxu1 }
 0x337   :  { %v3625_v39 = vpop.f32.mrb[17].mxu1 }
 0x338   :  { %v1104_v62 = vpop.f32.mrb[18].mxu1 }
 0x339   :  { %v3626_v37 = vpop.f32.mrb[19].mxu1 }
 0x33e   :  { %v1150_v42 = vpop.f32.mrb[20].mxu1 }
 0x33f   :  { %v1157_v43 = vmax.f32 %v1101_v38, %v1150_v42  ;;  %v3633_v47 = vpop.f32.mrb[21].mxu1  ;;  %v3824_v38 = vld [vmem:[%s5277_s5 + $0xc0] ss:$8 sps:$4 sm:$0xff]  }
 0x340   :  { %v1153_v54 = vpop.f32.mrb[22].mxu1  ;;  %2012 = vmatpush1.bf16.msra.mxu0 %v3824_v38  ;;  %v3908_v38 = vld [vmem:[%s5279_s7 + $0x20] sm:$0xff]  }
 0x341   :  { %v3541_v3 = vpack.c.bf16 %v1157_v43, %v1157_v43  ;;  %v1158_v4 = vmax.f32 %v1104_v62, %v1153_v54  ;;  %v3634_v10 = vpop.f32.mrb[23].mxu1  ;;  %v3827_v54 = vld [vmem:[%s5277_s5 + $0xd0] ss:$8 sps:$4 sm:$0xff]   ;;  %2013 = vmatprep.subr.bf16.mxu0 %v3829_v41 }
 0x343   :  { %v4682_v51 = vpack.c.bf16 %v1158_v4, %v1158_v4  ;;  %v1172_v55 = vshrl.u32 %v3541_v3, 16  ;;  %v1175_v24 = vshll.u32 %v3541_v3, 16  ;;  %1168 = vst.msk [vmem:[#allocation3] sm:$0xf] %vm1167_vm4, %v3541_v3  ;;  %v3348_v57 = vrot.slane %v3541_v3, 9 }
 0x344   :  { %v3349_v46 = vrot.slane %v3541_v3, 10  ;;  %2014 = vmatpush1.bf16.msra.mxu0 %v3827_v54 }
 0x345   :  { %v1211_v60 = vrot.slane %v4682_v51, 5  ;;  %v1174_v63 = vrot.slane %v1172_v55, 4  ;;  %v1177_v0 = vrot.slane %v1175_v24, 5  ;;  %v1181_v1 = vshll.u32 %v4682_v51, 16  ;;  %1170 = vst.msk [vmem:[#allocation3 + $0x14] sm:$0x1] %vm1169_vm3, %v4682_v51 }
 0x346   :  { %v1185_v45 = vshrl.u32 %v4682_v51, 16  ;;  %v1262_v50 = vrot.slane %v4682_v51, 6  ;;  %v1232_v2 = vrot.slane %v1172_v55, 5  ;;  %v1233_v13 = vrot.slane %v1175_v24, 6  ;;  %v3832_v55 = vld [vmem:[%s5277_s5 + $0xe4] ss:$8 sps:$4 sm:$0xff]  }
 0x347   :  { %v1212_v17 = vsel %vm4099_vm2, %v3348_v57, %v1211_v60  ;;  %v1178_v26 = vor.u32 %v1177_v0, %v1174_v63  ;;  %v1183_v53 = vrot.slane %v1181_v1, 5  ;;  %v1237_v56 = vrot.slane %v1181_v1, 6  ;;  %2015 = vmatprep.subr.bf16.mxu0 %v3832_v55 }
 0x348   :  { %1214 = vrot.lane.b32.xlu1 %v1212_v17, %s3998_s16  ;;  %v1187_v61 = vrot.slane %v1185_v45, 4  ;;  %v1236_v6 = vrot.slane %v1185_v45, 5  ;;  %v4708_v12 = vsel %vm4333_vm6, %v3349_v46, %v1262_v50  ;;  %v1234_v23 = vor.u32 %v1233_v13, %v1232_v2  ;;  %2016 = vmatpush1.bf16.msra.mxu0 %v3830_v59 }
 0x349   :  { %v1179_v52 = vrot.slane %v1178_v26, 4  ;;  %v1330_v29 = vpop.f32.mrb[24].mxu1  ;;  %vm1392_vm6 = vcmask 912385   ;;  %v3835_v26 = vld [vmem:[%s5277_s5 + $0xf4] ss:$8 sps:$4 sm:$0xff]  }
 0x34a   :  { %v1188_v25 = vor.u32 %v1187_v61, %v1183_v53  ;;  %v4713_v28 = vor.u32 %v1237_v56, %v1236_v6  ;;  %v4717_v30 = vrot.slane %v1234_v23, 4  ;;  %v3641_v8 = vpop.f32.mrb[25].mxu1  ;;  %2017 = vmatprep.subr.bf16.mxu0 %v3835_v26  ;;  %v1213_v23 = vrot.slane %v1211_v60, 4 }
 0x34b   :  { %v1184_v18 = vsel %vm4143_vm7, %v1179_v52, %v1183_v53  ;;  %v1333_v32 = vpop.f32.mrb[26].mxu1  ;;  %v1264_v60 = vrot.slane %v1262_v50, 4 }
 0x34c   :  { %1190 = vrot.lane.b32.xlu0 %v1184_v18, %s4002_s30  ;;  %v1189_v20 = vrot.slane %v1188_v25, 4  ;;  %v1239_v33 = vsel %vm4157_vm8, %v4717_v30, %v4713_v28  ;;  %v3642_v34 = vpop.f32.mrb[27].mxu1  ;;  %v1240_v53 = vrot.slane %v4713_v28, 4  ;;  %2018 = vmatpush1.bf16.msra.mxu0 %v3833_v14  ;;  %v3841_v18 = vld [vmem:[%s5277_s5 + $0x104] ss:$8 sps:$4 sm:$0xff]   ;;  %vm1225_vm8 = vcmask 654340  }
 0x34d   :  { %2038 = vmatprep.subr.bf16.mxu0 %v3841_v18  ;;  %v3904_v28 = vld [vmem:[%s5279_s7] sm:$0xff]   ;;  %v3905_v30 = vld [vmem:[%s5279_s7 + $0x8] sm:$0xff]   ;;  %vm1226_vm3 = vmor %vm1225_vm8, %vm207_vm0  ;;  %vm1422_vm0 = vcmask 1044353  }
 0x34e   :  { %1192 = vrot.lane.b32.xlu1 %v1189_v20, %s4002_s30  ;;  %2237 = vmatpush1.bf16.msra.mxu1 %v3904_v28  ;;  %v3844_v14 = vld [vmem:[%s5277_s5 + $0x114] ss:$8 sps:$4 sm:$0xff]  }
 0x34f   :  { %2238 = vmatprep.subr.bf16.mxu1 %v3999_v44 }
 0x351   :  { %v1371_v39 = vpop.f32.mrb[28].mxu1 }
 0x352   :  { %v1378_v62 = vmax.f32 %v1330_v29, %v1371_v39  ;;  %v3649_v37 = vpop.f32.mrb[29].mxu1  ;;  %2239 = vmatpush1.bf16.msra.mxu1 %v3905_v30 }
 0x353   :  { %v1374_v40 = vpop.f32.mrb[30].mxu1  ;;  %2240 = vmatprep.subr.bf16.mxu1 %v3999_v44 }
 0x354   :  { %v3543_v42 = vpack.c.bf16 %v1378_v62, %v1378_v62  ;;  %v1379_v43 = vmax.f32 %v1333_v32, %v1374_v40  ;;  %v3650_v47 = vpop.f32.mrb[31].mxu1  ;;  %v3906_v32 = vld [vmem:[%s5279_s7 + $0x10] sm:$0xff]   ;;  %v3909_v62 = vld [vmem:[%s5279_s7 + $0x28] sm:$0xff]  }
 0x356   :  { %v3544_v3 = vpack.c.bf16 %v1379_v43, %v1379_v43  ;;  %1430 = vrot.lane.b32.xlu1 %v3543_v42, %s3998_s16  ;;  %v1397_v4 = vshrl.u32 %v3543_v42, 16  ;;  %v1400_v10 = vshll.u32 %v3543_v42, 16  ;;  %v3354_v22 = vrot.slane %v3543_v42, 9  ;;  %2241 = vmatpush1.bf16.msra.mxu1 %v3906_v32  ;;  %v3849_v32 = vld [vmem:[%s5277_s5 + $0x130] ss:$8 sps:$4 sm:$0xff]  }
 0x357   :  { %v1386_v49 = vrot.slane %v3543_v42, 7  ;;  %2242 = vmatprep.subr.bf16.mxu1 %v3999_v44  ;;  %v3910_v42 = vld [vmem:[%s5279_s7 + $0x30] sm:$0xff]  }
 0x358   :  { %v1399_v24 = vrot.slane %v1397_v4, 7  ;;  %v1448_v57 = vrot.slane %v1400_v10, 5  ;;  %v1405_v46 = vshrl.u32 %v3544_v3, 16  ;;  %v1408_v58 = vshll.u32 %v3544_v3, 16 }
 0x359   :  { %v1476_v63 = vrot.slane %v3544_v3, 5  ;;  %v1447_v0 = vrot.slane %v1397_v4, 4  ;;  %v1387_v1 = vrot.slane %v1386_v49, 4  ;;  %1393 = vst.msk [vmem:[#allocation3 + $0x14] sm:$0xe] %vm1392_vm6, %v1386_v49  ;;  %v1388_v45 = vrot.slane %v3544_v3, 7 }
 0x35a   :  { %1432 = vrot.lane.b32.xlu1 %v3544_v3, %s3998_s16  ;;  %v1402_v2 = vor.u32 %v1400_v10, %v1399_v24  ;;  %v1407_v13 = vrot.slane %v1405_v46, 7  ;;  %v1403_v56 = vrot.slane %v1399_v24, 4  ;;  %v1451_v52 = vrot.slane %v1408_v58, 5  ;;  %2243 = vmatpush1.bf16.msra.mxu1 %v3907_v36  ;;  %v3860_v36 = vld [vmem:[%s5277_s5 + $0x154] ss:$8 sps:$4 sm:$0xff]  }
 0x35b   :  { %v1477_v11 = vsel %vm4099_vm2, %v3354_v22, %v1476_v63  ;;  %v1449_v17 = vor.u32 %v1448_v57, %v1447_v0  ;;  %v1389_v6 = vsel %vm4307_vm1, %v1387_v1, %v1388_v45  ;;  %v1478_v35 = vrot.slane %v1476_v63, 4  ;;  %2244 = vmatprep.subr.bf16.mxu1 %v3999_v44  ;;  %v3911_v22 = vld [vmem:[%s5279_s7 + $0x38] sm:$0xff]  }
 0x35c   :  { %1412 = vrot.lane.b32.xlu0 %v1402_v2, %s4002_s30  ;;  %v1410_v61 = vor.u32 %v1408_v58, %v1407_v13  ;;  %1395 = vst.msk [vmem:[#allocation3 + $0x28] sm:$0x3] %vm1394_vm12, %v1389_v6  ;;  %v1453_v5 = vrot.slane %v1405_v46, 4  ;;  %vm1201_vm2 = vcmask 1044352   ;;  %vm5297_vm1 = vcmask 916480  }
 0x35d   :  { %v1450_v7 = vrot.slane %v1449_v17, 4  ;;  %vm1423_vm12 = vcmask 785413  }
 0x35e   :  { %1243 = vrot.lane.b32.xlu1 %v1240_v53, %s4003_s19  ;;  %v1411_v25 = vsel %vm4349_vm11, %v1403_v56, %v1410_v61  ;;  %vm5288_vm11 = vcmask 1041280   ;;  %2245 = vmatpush1.bf16.msra.mxu1 %v3908_v38  ;;  %vm1424_vm8 = vmor %vm1423_vm12, %vm1422_vm0  ;;  %vm1247_vm0 = vcmask 654336   ;;  %v3858_v38 = vld [vmem:[%s5277_s5 + $0x150] ss:$8 sps:$4 sm:$0xff]  }
 0x35f   :  { %v1452_v9 = vsel %vm4143_vm7, %v1450_v7, %v1451_v52  ;;  %vm1202_vm7 = vcmask 785412   ;;  %vm1207_vm6 = vmor %vm1206_vm13, %vm5288_vm11  ;;  %2246 = vmatprep.subr.bf16.mxu1 %v3999_v44  ;;  %vm1228_vm13 = vcmask 1041152   ;;  %vm1257_vm11 = vcmask 520196  }
 0x360   :  { %1216 = vrot.lane.b32.xlu0 %v1213_v23, %s3998_s16  ;;  %vm1203_vm4 = vmor %vm1202_vm7, %vm1201_vm2  ;;  %vm1440_vm2 = vcmask 1044225   ;;  %vm1441_vm7 = vcmask 654341   ;;  %v3842_v23 = vld [vmem:[%s5277_s5 + $0x110] ss:$8 sps:$4 sm:$0xff]  }
 0x362   :  { %1265 = vrot.lane.b32.xlu1 %v4708_v12, %s3996_s23  ;;  %v1454_v12 = vor.u32 %v1453_v5, %v1451_v52  ;;  %2247 = vmatpush1.bf16.msra.mxu1 %v3909_v62  ;;  %v3861_v62 = vld [vmem:[%s5277_s5 + $0x160] ss:$8 sps:$4 sm:$0xff]  }
 0x363   :  { %2248 = vmatprep.subr.bf16.mxu1 %v3999_v44 }
 0x364   :  { %1414 = vrot.lane.b32.xlu0 %v1411_v25, %s4002_s30  ;;  %v1455_v29 = vrot.slane %v1454_v12, 4 }
 0x366   :  { %1479 = vrot.lane.b32.xlu1 %v1477_v11, %s3996_s23  ;;  %2249 = vmatpush1.bf16.msra.mxu1 %v3910_v42  ;;  %v3839_v11 = vld [vmem:[%s5277_s5 + $0x100] ss:$8 sps:$4 sm:$0xff]  }
 0x367   :  { %2250 = vmatprep.subr.bf16.mxu1 %v3999_v44  ;;  %v3867_v42 = vld [vmem:[%s5277_s5 + $0x180] ss:$8 sps:$4 sm:$0xff]  }
 0x368   :  { %1241 = vrot.lane.b32.xlu0 %v1239_v33, %s4003_s19 }
 0x36a   :  { %1481 = vrot.lane.b32.xlu1 %v1478_v35, %s3996_s23  ;;  %2251 = vmatpush1.bf16.msra.mxu1 %v3911_v22  ;;  %v3848_v35 = vld [vmem:[%s5277_s5 + $0x124] ss:$8 sps:$4 sm:$0xff]  }
 0x36b   :  { %2252 = vmatprep.subr.bf16.mxu1 %v3999_v44  ;;  %v3881_v22 = vld [vmem:[%s5277_s5 + $0x1c4] ss:$8 sps:$4 sm:$0xff]  }
 0x36c   :  { %1456 = vrot.lane.b32.xlu0 %v1452_v9, %s4003_s19 }
 0x370   :  { %1267 = vrot.lane.b32.xlu0 %v1264_v60, %s3996_s23 }
 0x374   :  { %1458 = vrot.lane.b32.xlu0 %v1455_v29, %s4003_s19 }
 0x3ba   :  { %v1215_v48 = vpop.permute.xlu1 %1214 }
 0x3bb   :  { %v1218_v51 = vrot.slane %v1215_v48, 4 }
 0x3bd   :  { %v1221_v31 = vsel %vm784_vm9, %v1218_v51, %v1215_v48  ;;  %v3846_v48 = vld [vmem:[%s5277_s5 + $0x120] ss:$8 sps:$4 sm:$0xff]  }
 0x3be   :  { %v1191_v50 = vpop.permute.xlu0 %1190 }
 0x3bf   :  { %v1194_v20 = vrot.slane %v1191_v50, 4 }
 0x3c0   :  { %v1193_v8 = vpop.permute.xlu1 %1192 }
 0x3c1   :  { %v1197_v33 = vsel %vm5297_vm1, %v1194_v20, %v1191_v50  ;;  %v1195_v27 = vrot.slane %v1193_v8, 4  ;;  %v3851_v50 = vld [vmem:[%s5277_s5 + $0x134] ss:$8 sps:$4 sm:$0xff]  }
 0x3c2   :  { %1204 = vst.msk [vmem:[#allocation3] sm:$0xff] %vm1203_vm4, %v1197_v33  ;;  %vm1229_vm4 = vcmask 651268  }
 0x3c3   :  { %v1198_v34 = vsel %vm5297_vm1, %v1195_v27, %v1193_v8  ;;  %1227 = vst.msk [vmem:[#allocation3 + $0x4] sm:$0xff] %vm1226_vm3, %v1221_v31  ;;  %vm1442_vm3 = vmor %vm1441_vm7, %vm1440_vm2  ;;  %vm1426_vm2 = vcmask 1042304   ;;  %vm1427_vm7 = vcmask 783364   ;;  %v3854_v27 = vld [vmem:[%s5277_s5 + $0x144] ss:$8 sps:$4 sm:$0xff]  }
 0x3c4   :  { %1208 = vst.msk [vmem:[#allocation3 + $0x14] sm:$0x11] %vm1207_vm6, %v1198_v34  ;;  %vm5291_vm6 = vcmask 1041024   ;;  %vm1230_vm12 = vmor %vm1229_vm4, %vm1228_vm13  ;;  %vm1252_vm4 = vcmask 1044096   ;;  %v3852_v31 = vld [vmem:[%s5277_s5 + $0x140] ss:$8 sps:$4 sm:$0xff]  }
 0x3c5   :  { %vm1258_vm14 = vmor %vm1257_vm11, %vm5291_vm6  ;;  %vm1276_vm11 = vcmask 1043968   ;;  %vm1277_vm6 = vcmask 392196  }
 0x3c6   :  { %vm1445_vm13 = vmor %vm1444_vm5, %vm211_vm10  ;;  %vm1489_vm10 = vcmask 1043969   ;;  %vm1490_vm5 = vcmask 392197  }
 0x3c8   :  { %v1431_v39 = vpop.permute.xlu1 %1430 }
 0x3c9   :  { %v1434_v40 = vrot.slane %v1431_v39, 4 }
 0x3cb   :  { %v1436_v3 = vsel %vm784_vm9, %v1434_v40, %v1431_v39  ;;  %v3863_v39 = vld [vmem:[%s5277_s5 + $0x164] ss:$8 sps:$4 sm:$0xff]   ;;  %v3864_v40 = vld [vmem:[%s5277_s5 + $0x170] ss:$8 sps:$4 sm:$0xff]  }
 0x3cc   :  { %v1433_v37 = vpop.permute.xlu1 %1432 }
 0x3cd   :  { %v1435_v57 = vrot.slane %v1433_v37, 4 }
 0x3ce   :  { %v1413_v41 = vpop.permute.xlu0 %1412 }
 0x3cf   :  { %v1416_v43 = vrot.slane %v1413_v41, 4  ;;  %v1437_v0 = vsel %vm784_vm9, %v1435_v57, %v1433_v37  ;;  %v3866_v37 = vld [vmem:[%s5277_s5 + $0x174] ss:$8 sps:$4 sm:$0xff]   ;;  %v3887_v57 = vld [vmem:[%s5277_s5 + $0x1e4] ss:$8 sps:$4 sm:$0xff]  }
 0x3d0   :  { %v1244_v47 = vpop.permute.xlu1 %1243 }
 0x3d1   :  { %v1418_v54 = vsel %vm5297_vm1, %v1416_v43, %v1413_v41  ;;  %v1246_v4 = vrot.slane %v1244_v47, 4  ;;  %v3869_v41 = vld [vmem:[%s5277_s5 + $0x184] ss:$8 sps:$4 sm:$0xff]   ;;  %v3872_v43 = vld [vmem:[%s5277_s5 + $0x194] ss:$8 sps:$4 sm:$0xff]  }
 0x3d2   :  { %1425 = vst.msk [vmem:[#allocation3 + $0x14] sm:$0xee] %vm1424_vm8, %v1418_v54  ;;  %v1217_v10 = vpop.permute.xlu0 %1216  ;;  %vm1428_vm8 = vmor %vm1427_vm7, %vm1426_vm2  ;;  %vm1466_vm7 = vcmask 1044097   ;;  %v3875_v54 = vld [vmem:[%s5277_s5 + $0x1a4] ss:$8 sps:$4 sm:$0xff]  }
 0x3d3   :  { %v1219_v49 = vrot.slane %v1217_v10, 4  ;;  %1443 = vst.msk [vmem:[#allocation3 + $0x18] sm:$0xee] %vm1442_vm3, %v1436_v3  ;;  %v1249_v46 = vsel %vm1247_vm0, %v1246_v4, %v1244_v47  ;;  %vm1253_vm3 = vcmask 523268   ;;  %v3870_v47 = vld [vmem:[%s5277_s5 + $0x190] ss:$8 sps:$4 sm:$0xff]  }
 0x3d4   :  { %v1266_v24 = vpop.permute.xlu1 %1265  ;;  %vm1254_vm2 = vmor %vm1253_vm3, %vm1252_vm4  ;;  %vm1470_vm4 = vcmask 1042048   ;;  %vm1471_vm3 = vcmask 521220   ;;  %v3873_v3 = vld [vmem:[%s5277_s5 + $0x1a0] ss:$8 sps:$4 sm:$0xff]   ;;  %v3878_v4 = vld [vmem:[%s5277_s5 + $0x1b4] ss:$8 sps:$4 sm:$0xff]  }
 0x3d5   :  { %v1222_v55 = vsel %vm784_vm9, %v1219_v49, %v1217_v10  ;;  %v1269_v1 = vrot.slane %v1266_v24, 4  ;;  %vm1468_vm9 = vmor %vm1467_vm15, %vm1466_vm7  ;;  %v3876_v10 = vld [vmem:[%s5277_s5 + $0x1b0] ss:$8 sps:$4 sm:$0xff]   ;;  %v3879_v49 = vld [vmem:[%s5277_s5 + $0x1c0] ss:$8 sps:$4 sm:$0xff]  }
 0x3d6   :  { %1231 = vst.msk [vmem:[#allocation3 + $0x18] sm:$0x11] %vm1230_vm12, %v1222_v55  ;;  %v1415_v58 = vpop.permute.xlu0 %1414  ;;  %vm5294_vm12 = vcmask 523264   ;;  %v3884_v55 = vld [vmem:[%s5277_s5 + $0x1d4] ss:$8 sps:$4 sm:$0xff]  }
 0x3d7   :  { %v1417_v59 = vrot.slane %v1415_v58, 4  ;;  %1259 = vst.msk [vmem:[#allocation3 + $0x1c] sm:$0x11] %vm1258_vm14, %v1249_v46  ;;  %vm1278_vm14 = vmor %vm1277_vm6, %vm1276_vm11  ;;  %v1272_v56 = vsel %vm5294_vm12, %v1269_v1, %v1266_v24  ;;  %vm1493_vm11 = vcmask 1041920   ;;  %v3882_v24 = vld [vmem:[%s5277_s5 + $0x1d0] ss:$8 sps:$4 sm:$0xff]  }
 0x3d8   :  { %v1480_v2 = vpop.permute.xlu1 %1479  ;;  %vm1491_vm6 = vmor %vm1490_vm5, %vm1489_vm10  ;;  %v3885_v46 = vld [vmem:[%s5277_s5 + $0x1e0] ss:$8 sps:$4 sm:$0xff]   ;;  %vm1980_vm10 = vcmask 392192   ;;  %vm5313_vm5 = vmmov 0  }
 0x3d9   :  { %v1419_v63 = vsel %vm5297_vm1, %v1417_v59, %v1415_v58  ;;  %v3836_v26 = vld [vmem:[#allocation3] ss:$20 sps:$4 sm:$0xff]   ;;  %v1483_v61 = vrot.slane %v1480_v2, 4  ;;  %v3890_v58 = vld [vmem:[%s5277_s5 + $0x1f4] ss:$8 sps:$4 sm:$0xff]  }
 0x3da   :  { %1429 = vst.msk [vmem:[#allocation3 + $0x28] sm:$0x33] %vm1428_vm8, %v1419_v63  ;;  %v1242_v45 = vpop.permute.xlu0 %1241  ;;  %vm5295_vm8 = vcmask 1040896   ;;  %v3888_v59 = vld [vmem:[%s5277_s5 + $0x1f0] ss:$8 sps:$4 sm:$0xff]  }
 0x3db   :  { %1446 = vst.msk [vmem:[#allocation3 + $0x2c] sm:$0x33] %vm1445_vm13, %v1437_v0  ;;  %v1245_v13 = vrot.slane %v1242_v45, 4  ;;  %vm1281_vm13 = vcmask 389124   ;;  %v1485_v25 = vsel %vm5294_vm12, %v1483_v61, %v1480_v2  ;;  %v3894_v63 = vld [vmem:[%s5277_s5 + $0x204] ss:$8 sps:$4 sm:$0xff]  }
 0x3dc   :  { %v1482_v5 = vpop.permute.xlu1 %1481  ;;  %vm1282_vm15 = vmor %vm1281_vm13, %vm5295_vm8  ;;  %v3892_v1 = vld [vmem:[%s5277_s5 + $0x200] ss:$8 sps:$4 sm:$0xff]   ;;  %v3898_v2 = vld [vmem:[%s5277_s5 + $0x214] ss:$8 sps:$4 sm:$0xff]  }
 0x3dd   :  { %v1248_v17 = vsel %vm1247_vm0, %v1245_v13, %v1242_v45  ;;  %v3838_v53 = vld [vmem:[#allocation3 + $0x4] ss:$20 sps:$4 sm:$0xff]   ;;  %v1484_v28 = vrot.slane %v1482_v5, 4 }
 0x3de   :  { %1255 = vst.msk [vmem:[#allocation3 + $0x8] sm:$0xff] %vm1254_vm2, %v1248_v17  ;;  %v1457_v6 = vpop.permute.xlu0 %1456  ;;  %2019 = vmatprep.mubr.bf16.mxu0 %v3838_v53  ;;  %vm1494_vm2 = vcmask 390148   ;;  %v3901_v17 = vld [vmem:[%s5277_s5 + $0x224] ss:$8 sps:$4 sm:$0xff]  }
 0x3df   :  { %1279 = vst.msk [vmem:[#allocation3 + $0xc] sm:$0xff] %vm1278_vm14, %v1272_v56  ;;  %v1460_v7 = vrot.slane %v1457_v6, 4  ;;  %2020 = vmatmul.mubr.bf16.vlgmr.msra.gmra.mrb[32].mxu0 %v3836_v26  ;;  %vm1472_vm14 = vmor %vm1471_vm3, %vm1470_vm4  ;;  %v1486_v33 = vsel %vm5294_vm12, %v1484_v28, %v1482_v5  ;;  %v3899_v26 = vld [vmem:[%s5277_s5 + $0x220] ss:$8 sps:$4 sm:$0xff]   ;;  %vm2423_vm4 = vcmask 647168  }
 0x3e0   :  { %2039 = vmatpush1.bf16.msra.mxu0 %v3839_v11  ;;  %vm1495_vm7 = vmor %vm1494_vm2, %vm1493_vm11  ;;  %v3896_v11 = vld [vmem:[%s5277_s5 + $0x210] ss:$8 sps:$4 sm:$0xff]   ;;  %vm5318_vm3 = vsmask.f32 256  ;;  %vm2416_vm2 = vcmask 1040512  }
 0x3e1   :  { %v1462_v52 = vsel %vm1247_vm0, %v1460_v7, %v1457_v6  ;;  %2040 = vmatprep.subr.bf16.mxu0 %v3844_v14  ;;  %v3912_v6 = vld [vmem:[%s5279_s7 + $0x40] sm:$0xff]   ;;  %v3913_v14 = vld [vmem:[%s5279_s7 + $0x48] sm:$0xff]   ;;  %vm2424_vm11 = vmand %vm2423_vm4, %vm5318_vm3  ;;  %2417 = vst.msk [vmem:[#allocation4 + $0x3] sm:$0x1] %vm2416_vm2, %v3999_v44 }
 0x3e2   :  { %1469 = vst.msk [vmem:[#allocation3 + $0x1c] sm:$0xee] %vm1468_vm9, %v1462_v52  ;;  %v1268_v9 = vpop.permute.xlu0 %1267  ;;  %v1503_v18 = vld [vmem:[#allocation3 + $0x28] sm:$0x33]  ;;  %2253 = vmatpush1.bf16.msra.mxu1 %v3912_v6  ;;  %vm5314_vm9 = vcmask 261120  }
 0x3e3   :  { %1492 = vst.msk [vmem:[#allocation3 + $0x20] sm:$0xee] %vm1491_vm6, %v1485_v25  ;;  %v1270_v60 = vrot.slane %v1268_v9, 4  ;;  %v3361_v12 = vcombine.high %v1503_v18, %v1503_v18  ;;  %v3360_v51 = vcombine.low %v1503_v18, %v1503_v18  ;;  %2254 = vmatprep.subr.bf16.mxu1 %v3999_v44  ;;  %v1576_v7 = vld [vmem:[%s5278_s6] sm:$0x3]  ;;  %vm5315_vm6 = vmmov %vm5314_vm9 }
 0x3e4   :  { %2041 = vmatpush1.bf16.msra.mxu0 %v3842_v23  ;;  %v1581_v52 = vrot.slane %v1576_v7, %v425_v16  ;;  %v1585_v23 = vrot.slane %v1576_v7, %v429_v19  ;;  %v3914_v16 = vld [vmem:[%s5279_s7 + $0x50] sm:$0xff]   ;;  %vm5316_vm13 = vmmov %vm5315_vm6 }
 0x3e5   :  { %v1273_v29 = vsel %vm5294_vm12, %v1270_v60, %v1268_v9  ;;  %2029 = vmatprep.mubr.bf16.mxu0 %v3361_v12  ;;  %2042 = vmatprep.subr.bf16.mxu0 %v3848_v35 }
 0x3e6   :  { %1283 = vst.msk [vmem:[#allocation3 + $0x20] sm:$0x11] %vm1282_vm15, %v1273_v29  ;;  %v1459_v30 = vpop.permute.xlu0 %1458  ;;  %2255 = vmatpush1.bf16.msra.mxu1 %v3913_v14  ;;  %vm5317_vm15 = vmmov %vm5315_vm6 }
 0x3e7   :  { %v1461_v20 = vrot.slane %v1459_v30, 4  ;;  %2030 = vmatmul.mubr.bf16.gmra.mrb[36].mxu0 %v3360_v51  ;;  %2365 = vmatprep.subr.bf16.mxu1 %v3999_v44 }
 0x3e8   :  { %2043 = vmatpush1.bf16.msra.mxu0 %v3846_v48 }
 0x3e9   :  { %v1463_v8 = vsel %vm1247_vm0, %v1461_v20, %v1459_v30  ;;  %2044 = vmatprep.subr.bf16.mxu0 %v3851_v50  ;;  %v3855_v45 = vld [vmem:[#allocation3 + $0x8] ss:$20 sps:$4 sm:$0xff]  }
 0x3ea   :  { %1473 = vst.msk [vmem:[#allocation3 + $0x30] sm:$0x33] %vm1472_vm14, %v1463_v8  ;;  %vm2458_vm14 = vcmask 254977  }
 0x3eb   :  { %1496 = vst.msk [vmem:[#allocation3 + $0x34] sm:$0x33] %vm1495_vm7, %v1486_v33  ;;  %vm5319_vm7 = vmmov %vm5318_vm3  ;;  %vm5296_vm3 = vcmask 909568  }
 0x3ec   :  { %2045 = vmatpush1.bf16.msra.mxu0 %v3849_v32  ;;  %vm5322_vm2 = vmmov %vm5319_vm7 }
 0x3ed   :  { %v3857_v34 = vld [vmem:[#allocation3 + $0xc] ss:$20 sps:$4 sm:$0xff]   ;;  %2046 = vmatprep.subr.bf16.mxu0 %v3854_v27  ;;  %v3902_v56 = vld [vmem:[#allocation3 + $0x10] ss:$20 sps:$4 sm:$0xff]   ;;  %vm2469_vm12 = vmand %vm5296_vm3, %vm5322_vm2  ;;  %vm5326_vm3 = vcmask 1041024  }
 0x3ee   :  { %2070 = vmatprep.mubr.bf16.mxu0 %v3857_v34 }
 0x3f0   :  { %2047 = vmatpush1.bf16.msra.mxu0 %v3852_v31 }
 0x3f1   :  { %2048 = vmatprep.subr.bf16.mxu0 %v3860_v36  ;;  %v3915_v36 = vld [vmem:[%s5279_s7 + $0x58] sm:$0xff]  }
 0x3f2   :  { %v1504_v0 = vld [vmem:[#allocation3 + $0x30] sm:$0x33]  ;;  %v3903_v61 = vld [vmem:[#allocation3 + $0x38] ss:$0 sps:$4 sm:$0x33]  }
 0x3f3   :  { %v3363_v13 = vcombine.high %v1504_v0, %v1504_v0  ;;  %v3362_v53 = vcombine.low %v1504_v0, %v1504_v0 }
 0x3f4   :  { %2049 = vmatpush1.bf16.msra.mxu0 %v3858_v38 }
 0x3f5   :  { %2050 = vmatprep.subr.bf16.mxu0 %v3863_v39 }
 0x3f8   :  { %2051 = vmatpush1.bf16.msra.mxu0 %v3861_v62  ;;  %v3916_v62 = vld [vmem:[%s5279_s7 + $0x60] sm:$0xff]  }
 0x3f9   :  { %2052 = vmatprep.subr.bf16.mxu0 %v3866_v37 }
 0x3fc   :  { %2053 = vmatpush1.bf16.msra.mxu0 %v3864_v40  ;;  %v3917_v40 = vld [vmem:[%s5279_s7 + $0x68] sm:$0xff]  }
 0x3fd   :  { %2054 = vmatprep.subr.bf16.mxu0 %v3869_v41  ;;  %v3918_v41 = vld [vmem:[%s5279_s7 + $0x70] sm:$0xff]  }
 0x400   :  { %2055 = vmatpush1.bf16.msra.mxu0 %v3867_v42  ;;  %v3919_v42 = vld [vmem:[%s5279_s7 + $0x78] sm:$0xff]  }
 0x401   :  { %2056 = vmatprep.subr.bf16.mxu0 %v3872_v43  ;;  %v3920_v43 = vld [vmem:[%s5279_s7 + $0x80] sm:$0xff]  }
 0x404   :  { %2057 = vmatpush1.bf16.msra.mxu0 %v3870_v47  ;;  %v3921_v47 = vld [vmem:[%s5279_s7 + $0x88] sm:$0xff]  }
 0x405   :  { %2058 = vmatprep.subr.bf16.mxu0 %v3875_v54  ;;  %v3922_v54 = vld [vmem:[%s5279_s7 + $0x90] sm:$0xff]  }
 0x408   :  { %2059 = vmatpush1.bf16.msra.mxu0 %v3873_v3  ;;  %v3923_v3 = vld [vmem:[%s5279_s7 + $0x98] sm:$0xff]  }
 0x409   :  { %2060 = vmatprep.subr.bf16.mxu0 %v3878_v4 }
 0x40c   :  { %2061 = vmatpush1.bf16.msra.mxu0 %v3876_v10 }
 0x40d   :  { %2062 = vmatprep.subr.bf16.mxu0 %v3881_v22 }
 0x410   :  { %2063 = vmatpush1.bf16.msra.mxu0 %v3879_v49 }
 0x411   :  { %2064 = vmatprep.subr.bf16.mxu0 %v3884_v55 }
 0x414   :  { %2065 = vmatpush1.bf16.msra.mxu0 %v3882_v24 }
 0x415   :  { %2066 = vmatprep.subr.bf16.mxu0 %v3887_v57 }
 0x418   :  { %2067 = vmatpush1.bf16.msra.mxu0 %v3885_v46 }
 0x419   :  { %2068 = vmatprep.subr.bf16.mxu0 %v3890_v58  ;;  %v4004_v58 = vmov 1966171168  }
 0x41c   :  { %2069 = vmatpush1.bf16.msra.mxu0 %v3888_v59  ;;  %v2430_v59 = vunpack.c.l.s4 %v4004_v58 }
 0x41d   :  { %2089 = vmatprep.subr.bf16.mxu0 %v3894_v63 }
 0x41e   :  { %v2431_v0 = vunpack.c.0.s8 %v2430_v59 }
 0x41f   :  { %2071 = vmatmul.mubr.bf16.vlgmr.msra.gmra.mrb[32].mxu0 %v3855_v45 }
 0x420   :  { %2080 = vmatprep.mubr.bf16.mxu0 %v3363_v13  ;;  %2090 = vmatpush1.bf16.msra.mxu0 %v3892_v1 }
 0x421   :  { %2091 = vmatprep.subr.bf16.mxu0 %v3898_v2 }
 0x424   :  { %2092 = vmatpush1.bf16.msra.mxu0 %v3896_v11 }
 0x425   :  { %2093 = vmatprep.subr.bf16.mxu0 %v3901_v17 }
 0x427   :  { %2081 = vmatmul.mubr.bf16.gmra.mrb[36].mxu0 %v3362_v53 }
 0x428   :  { %2094 = vmatpush1.bf16.msra.mxu0 %v3899_v26  ;;  %2121 = vmatprep.mubr.bf16.mxu0 %v3999_v44  ;;  %v5019_v26 = vsub.s32 %v2431_v0, %v4578_v15 }
 0x429   :  { %3651 = vmatprep.subr.bf16.mxu0 %v4000_v21 }
 0x42f   :  { %3435 = vmatmul.mubr.msk.bf16.vlgmr.msra.gmra.mrb[32].mxu0 %vm1980_vm10, %v3902_v56 }
 0x430   :  { %2131 = vmatprep.mubr.bf16.mxu0 %v3999_v44 }
 0x437   :  { %3436 = vmatmul.mubr.msk.bf16.gmra.mrb[36].mxu0 %vm1980_vm10, %v3903_v61  ;;  %v2425_v61 = vld [vmem:[#allocation4] sm:$0x1]  ;;  %vm5320_vm10 = vcmask 1041024  }
 0x438   :  { %3667 = vmatprep.mubr.msk.bf16.mxu0 %vm5313_vm5, %v4000_v21 }
 0x502   :  { %v2123_v25 = vpop.f32.mrb[32].mxu0 }
 0x503   :  { %v3691_v9 = vadd.f32 %v2123_v25, %v1581_v52  ;;  %v2125_v18 = vpop.f32.mrb[33].mxu0 }
 0x504   :  { %v3692_v35 = vadd.f32 %v2125_v18, %v1585_v23  ;;  %v2127_v5 = vpop.f32.mrb[34].mxu0 }
 0x505   :  { %v3693_v60 = vadd.f32 %v2127_v5, %v1581_v52  ;;  %v2129_v12 = vpop.f32.mrb[35].mxu0  ;;  %v2140_v48 = vmax.f32 %v3691_v9, 0.0 }
 0x506   :  { %v3694_v29 = vadd.f32 %v2129_v12, %v1585_v23  ;;  %v2141_v30 = vmax.f32 %v3692_v35, 0.0 }
 0x507   :  { %v2142_v28 = vmax.f32 %v3693_v60, 0.0 }
 0x508   :  { %v2143_v51 = vmax.f32 %v3694_v29, 0.0 }
 0x509   :  { %v2146_v50 = vpack.c.bf16 %v2142_v28, %v2140_v48 }
 0x50a   :  { %v2147_v20 = vpack.c.bf16 %v2143_v51, %v2141_v30  ;;  %v2133_v8 = vpop.f32.mrb[36].mxu0 }
 0x50b   :  { %v3695_v19 = vadd.f32 %v2133_v8, %v1581_v52  ;;  %v2135_v32 = vpop.f32.mrb[37].mxu0 }
 0x50c   :  { %v3696_v33 = vadd.f32 %v2135_v32, %v1585_v23  ;;  %v2137_v27 = vpop.f32.mrb[38].mxu0  ;;  %3447 = vmatprep.mubr.msk.bf16.mxu1 %vm5314_vm9, %v2147_v20  ;;  %vm2457_vm9 = vmand %vm5320_vm10, %vm5319_vm7  ;;  %vm5298_vm7 = vcmask 517121  }
 0x50d   :  { %v2138_v31 = vpop.f32.mrb[39].mxu0  ;;  %2269 = vmatmul.mubr.bf16.vlgmr.msra.gmra.mrb[32].mxu1 %v2146_v50  ;;  %v2144_v38 = vmax.f32 %v3695_v19, 0.0  ;;  %vm5323_vm10 = vmmov %vm5322_vm2 }
 0x50e   :  { %v2145_v34 = vmax.f32 %v3696_v33, 0.0  ;;  %2366 = vmatpush1.bf16.msra.mxu1 %v3914_v16 }
 0x50f   :  { %2367 = vmatprep.subr.bf16.mxu1 %v3999_v44  ;;  %v2148_v37 = vpack.c.bf16 %v2144_v38, %v2144_v38 }
 0x510   :  { %v2149_v39 = vpack.c.bf16 %v2145_v34, %v2145_v34 }
 0x512   :  { %2368 = vmatpush1.bf16.msra.mxu1 %v3915_v36  ;;  %3448 = vmatprep.mubr.msk.bf16.mxu1 %vm5315_vm6, %v2149_v39  ;;  %vm5321_vm6 = vsmask.f32 1280 }
 0x513   :  { %2369 = vmatprep.subr.bf16.mxu1 %v3999_v44 }
 0x515   :  { %2277 = vmatmul.mubr.bf16.gmra.mrb[36].mxu1 %v2148_v37 }
 0x516   :  { %2370 = vmatpush1.bf16.msra.mxu1 %v3916_v62  ;;  %3479 = vmatprep.mubr.msk.bf16.mxu1 %vm5316_vm13, %v2147_v20  ;;  %vm2459_vm13 = vmand %vm2458_vm14, %vm5321_vm6 }
 0x517   :  { %2371 = vmatprep.subr.bf16.mxu1 %v3999_v44 }
 0x51a   :  { %2372 = vmatpush1.bf16.msra.mxu1 %v3917_v40  ;;  %v3925_v40 = vld [vmem:[%s5280_s8] sm:$0xff]  }
 0x51b   :  { %2373 = vmatprep.subr.bf16.mxu1 %v3999_v44 }
 0x51e   :  { %2374 = vmatpush1.bf16.msra.mxu1 %v3918_v41  ;;  %v3926_v41 = vld [vmem:[%s5280_s8 + $0x48] sm:$0xff]  }
 0x51f   :  { %2375 = vmatprep.subr.bf16.mxu1 %v3999_v44 }
 0x522   :  { %2376 = vmatpush1.bf16.msra.mxu1 %v3919_v42  ;;  %v3928_v42 = vld [vmem:[%s5280_s8 + $0x50] sm:$0xff]  }
 0x523   :  { %2377 = vmatprep.subr.bf16.mxu1 %v3999_v44 }
 0x526   :  { %2378 = vmatpush1.bf16.msra.mxu1 %v3920_v43  ;;  %v3929_v43 = vld [vmem:[%s5280_s8 + $0x10] sm:$0xff]  }
 0x527   :  { %2379 = vmatprep.subr.bf16.mxu1 %v3999_v44 }
 0x52a   :  { %2380 = vmatpush1.bf16.msra.mxu1 %v3921_v47  ;;  %v3930_v47 = vld [vmem:[%s5280_s8 + $0x58] sm:$0xff]  }
 0x52b   :  { %2381 = vmatprep.subr.bf16.mxu1 %v3999_v44 }
 0x52e   :  { %2382 = vmatpush1.bf16.msra.mxu1 %v3922_v54  ;;  %v3931_v54 = vld [vmem:[%s5280_s8 + $0x18] sm:$0xff]  }
 0x52f   :  { %2383 = vmatprep.subr.bf16.mxu1 %v3999_v44  ;;  %v3927_v44 = vld [vmem:[%s5280_s8 + $0x8] sm:$0xff]  }
 0x532   :  { %2384 = vmatpush1.bf16.msra.mxu1 %v3923_v3  ;;  %v3932_v3 = vld [vmem:[%s5280_s8 + $0x60] sm:$0xff]  }
 0x535   :  { %2398 = vmatmul.mubr.bf16.vlgmr.msra.gmra.mrb[40].mxu1 %v2146_v50 }
 0x536   :  { %3480 = vmatprep.mubr.msk.bf16.mxu1 %vm5317_vm15, %v2149_v39  ;;  %vm2460_vm15 = vmor %vm2459_vm13, %vm2457_vm9  ;;  %vm5324_vm9 = vcmask 1041280   ;;  %vm5325_vm13 = vsmask.f32 1280 }
 0x537   :  { %vm2480_vm6 = vmand %vm5324_vm9, %vm5323_vm10  ;;  %vm5329_vm9 = vsmask.f32 256 }
 0x53d   :  { %2406 = vmatmul.mubr.bf16.gmra.mrb[44].mxu1 %v2148_v37  ;;  %v3924_v37 = vld [vmem:[%s5280_s8 + $0x40] sm:$0xff]  }
 0x53e   :  { %3557 = vmatprep.subr.bf16.mxu1 %v3924_v37  ;;  %v3942_v37 = vld [vmem:[%s5280_s8 + $0xc8] sm:$0xff]  }
 0x53f   :  { %3558 = vmatpush3.bf16.msra.mxu1 %v3925_v40 }
 0x540   :  { %3559 = vmatprep.subr.bf16.mxu1 %v3926_v41  ;;  %v3943_v41 = vld [vmem:[%s5280_s8 + $0x88] sm:$0xff]  }
 0x543   :  { %3560 = vmatpush3.bf16.msra.mxu1 %v3927_v44  ;;  %v3944_v44 = vld [vmem:[%s5280_s8 + $0xd0] sm:$0xff]  }
 0x544   :  { %3561 = vmatprep.subr.bf16.mxu1 %v3928_v42  ;;  %v3946_v42 = vld [vmem:[%s5280_s8 + $0xd8] sm:$0xff]  }
 0x547   :  { %3562 = vmatpush3.bf16.msra.mxu1 %v3929_v43  ;;  %v3947_v43 = vld [vmem:[%s5280_s8 + $0x98] sm:$0xff]  }
 0x548   :  { %3563 = vmatprep.subr.bf16.mxu1 %v3930_v47  ;;  %v3948_v47 = vld [vmem:[%s5280_s8 + $0xe0] sm:$0xff]  }
 0x54b   :  { %3564 = vmatpush3.bf16.msra.mxu1 %v3931_v54  ;;  %v3949_v54 = vld [vmem:[%s5280_s8 + $0xa0] sm:$0xff]  }
 0x54c   :  { %3565 = vmatprep.subr.bf16.mxu1 %v3932_v3  ;;  %v3950_v3 = vld [vmem:[%s5280_s8 + $0xe8] sm:$0xff]  }
 0x5e0   :  { %v2270_v4 = vpop.f32.mrb[32].mxu1 }
 0x5e1   :  { %v2272_v10 = vpop.f32.mrb[33].mxu1 }
 0x5e2   :  { %v2273_v22 = vpop.f32.mrb[34].mxu1  ;;  %v3934_v10 = vld [vmem:[%s5280_s8 + $0x68] sm:$0xff]  }
 0x5e3   :  { %v2275_v49 = vpop.f32.mrb[35].mxu1 }
 0x5e4   :  { %v3936_v49 = vld [vmem:[%s5280_s8 + $0x70] sm:$0xff]  }
 0x5e8   :  { %v2278_v55 = vpop.f32.mrb[36].mxu1 }
 0x5e9   :  { %v2280_v24 = vpop.f32.mrb[37].mxu1 }
 0x5ea   :  { %v2281_v57 = vpop.f32.mrb[38].mxu1  ;;  %v3938_v24 = vld [vmem:[%s5280_s8 + $0x78] sm:$0xff]  }
 0x5eb   :  { %v2282_v46 = vpop.f32.mrb[39].mxu1  ;;  %v3939_v57 = vld [vmem:[%s5280_s8 + $0x38] sm:$0xff]  }
 0x5ec   :  { %v3940_v46 = vld [vmem:[%s5280_s8 + $0xc0] sm:$0xff]  }
 0x608   :  { %v2399_v63 = vpop.f32.mrb[40].mxu1 }
 0x609   :  { %v2413_v1 = vmax.f32 %v2270_v4, %v2399_v63  ;;  %v2401_v45 = vpop.f32.mrb[41].mxu1  ;;  %v3933_v4 = vld [vmem:[%s5280_s8 + $0x20] sm:$0xff]  }
 0x60a   :  { %v2402_v2 = vpop.f32.mrb[42].mxu1  ;;  %3566 = vmatpush3.bf16.msra.mxu1 %v3933_v4  ;;  %v3951_v4 = vld [vmem:[%s5280_s8 + $0xa8] sm:$0xff]  }
 0x60b   :  { %v2419_v13 = vrot.slane %v2413_v1, 1  ;;  %v2414_v11 = vmax.f32 %v2273_v22, %v2402_v2  ;;  %v2404_v17 = vpop.f32.mrb[43].mxu1  ;;  %v3935_v22 = vld [vmem:[%s5280_s8 + $0x28] sm:$0xff]   ;;  %3567 = vmatprep.subr.bf16.mxu1 %v3934_v10  ;;  %v3952_v10 = vld [vmem:[%s5280_s8 + $0xf0] sm:$0xff]  }
 0x60d   :  { %v2421_v53 = vmax.f32 %v2413_v1, %v2419_v13  ;;  %v2488_v56 = vrot.slane %v2414_v11, 1 }
 0x60e   :  { %3568 = vmatpush3.bf16.msra.mxu1 %v3935_v22  ;;  %v3953_v22 = vld [vmem:[%s5280_s8 + $0xb0] sm:$0xff]  }
 0x60f   :  { %v2422_v6 = vpack.c.bf16 %v2421_v53, %v2421_v53  ;;  %v2490_v14 = vmax.f32 %v2414_v11, %v2488_v56  ;;  %3569 = vmatprep.subr.bf16.mxu1 %v3936_v49  ;;  %v3954_v49 = vld [vmem:[%s5280_s8 + $0xf8] sm:$0xff]  }
 0x610   :  { %v2407_v7 = vpop.f32.mrb[44].mxu1 }
 0x611   :  { %v2426_v52 = vsel %vm2424_vm11, %v2422_v6, %v2425_v61  ;;  %v2435_v23 = vrot.slane %v2422_v6, %v5019_v26  ;;  %v2491_v25 = vpack.c.bf16 %v2490_v14, %v2490_v14  ;;  %v2415_v9 = vmax.f32 %v2278_v55, %v2407_v7  ;;  %v2409_v18 = vpop.f32.mrb[45].mxu1  ;;  %v3937_v55 = vld [vmem:[%s5280_s8 + $0x30] sm:$0xff]  }
 0x612   :  { %2427 = vst [vmem:[#allocation4] sm:$0x1] %v2426_v52  ;;  %v2410_v35 = vpop.f32.mrb[46].mxu1  ;;  %3570 = vmatpush3.bf16.msra.mxu1 %v3937_v55  ;;  %vm2532_vm11 = vsmask.f32 7938  ;;  %v3955_v55 = vld [vmem:[%s5280_s8 + $0xb8] sm:$0xff]  }
 0x613   :  { %v2499_v15 = vrot.slane %v2491_v25, %v5019_v26  ;;  %v2565_v5 = vrot.slane %v2415_v9, 1  ;;  %v2411_v60 = vpop.f32.mrb[47].mxu1  ;;  %v2443_v12 = vrot.slane %v2435_v23, %v5019_v26  ;;  %v2436_v29 = vcombine.high %v2435_v23, %v2435_v23  ;;  %3571 = vmatprep.subr.bf16.mxu1 %v3938_v24  ;;  %vm2533_vm8 = vmand %vm2423_vm4, %vm2532_vm11 }
 0x614   :  { %vm2547_vm4 = vsmask.f32 7942 }
 0x615   :  { %v2520_v48 = vcombine.high %v2499_v15, %v2499_v15  ;;  %v2567_v28 = vmax.f32 %v2415_v9, %v2565_v5  ;;  %v2464_v30 = vcombine.high %v2443_v12, %v2443_v12  ;;  %v2450_v51 = vrot.slane %v2436_v29, %v5019_v26  ;;  %vm2548_vm10 = vmand %vm2458_vm14, %vm2547_vm4 }
 0x616   :  { %v2506_v50 = vrot.slane %v2499_v15, %v5019_v26  ;;  %3572 = vmatpush3.bf16.msra.mxu1 %v3939_v57  ;;  %vm5333_vm14 = vcmask 909568   ;;  %v3956_v57 = vld [vmem:[%s5282_s10] sm:$0xff]  }
 0x617   :  { %v2568_v20 = vpack.c.bf16 %v2567_v28, %v2567_v28  ;;  %2465 = vrot.lane.b32.xlu1 %v2464_v30, %s3997_s20  ;;  %2451 = vrot.lane.b32.xlu0 %v2450_v51, %s4003_s19  ;;  %v5031_v8 = vrot.slane %v2520_v48, %v5019_v26  ;;  %v2473_v32 = vcombine.high %v2450_v51, %v2450_v51 }
 0x618   :  { %v2537_v16 = vcombine.high %v2506_v50, %v2506_v50  ;;  %3579 = vmatprep.subr.bf16.mxu1 %v3940_v46  ;;  %3652 = vmatpush3.bf16.msra.mxu0 %v3956_v57  ;;  %v3957_v46 = vld [vmem:[%s5282_s10 + $0x8] sm:$0xff]  }
 0x619   :  { %v2576_v19 = vrot.slane %v2568_v20, %v5019_v26  ;;  %v2553_v27 = vcombine.high %v5031_v8, %v5031_v8  ;;  %v2461_v0 = vld [vmem:[#allocation4] sm:$0x3]  ;;  %v2529_v45 = vshll.u32 %v5031_v8, 16  ;;  %3653 = vmatprep.subr.bf16.mxu0 %v4000_v21 }
 0x61a   :  { %v2539_v33 = vshll.u32 %v2537_v16, 16 }
 0x61b   :  { %2474 = vrot.lane.b32.xlu0 %v2473_v32, %s4002_s30  ;;  %v2598_v31 = vcombine.high %v2576_v19, %v2576_v19  ;;  %v2583_v34 = vrot.slane %v2576_v19, %v5019_v26  ;;  %v2555_v36 = vshll.u32 %v2553_v27, 16 }
 0x61c   :  { %2541 = vrot.lane.b32.xlu1 %v2539_v33, %s4003_s19  ;;  %3654 = vmatpush3.bf16.msra.mxu0 %v3957_v46 }
 0x61d   :  { %v2605_v38 = vrot.slane %v2598_v31, %v5019_v26  ;;  %v2585_v39 = vshll.u32 %v2583_v34, 16  ;;  %3655 = vmatprep.subr.bf16.mxu0 %v4000_v21 }
 0x61f   :  { %2507 = vrot.lane.b32.xlu0 %v2506_v50, %s3996_s23  ;;  %v2607_v62 = vshll.u32 %v2605_v38, 16 }
 0x620   :  { %2557 = vrot.lane.b32.xlu1 %v2555_v36, %s3997_s20 }
 0x623   :  { %2587 = vrot.lane.b32.xlu0 %v2585_v39, %s4002_s30  ;;  %v3941_v39 = vld [vmem:[%s5280_s8 + $0x80] sm:$0xff]  }
 0x624   :  { %2609 = vrot.lane.b32.xlu1 %v2607_v62, %s3996_s23 }
 0x689   :  { %v2452_v58 = vpop.permute.xlu0 %2451  ;;  %v2466_v2 = vpop.permute.xlu1 %2465 }
 0x68a   :  { %v2453_v59 = vrot.slane %v2452_v58, 7 }
 0x68c   :  { %v2454_v63 = vsel %vm1247_vm0, %v2453_v59, %v2452_v58  ;;  %v3958_v58 = vld [vmem:[%s5282_s10 + $0x10] sm:$0xff]   ;;  %v3959_v59 = vld [vmem:[%s5282_s10 + $0x18] sm:$0xff]  }
 0x68d   :  { %v2462_v1 = vsel %vm2460_vm15, %v2454_v63, %v2461_v0  ;;  %v2475_v56 = vpop.permute.xlu0 %2474  ;;  %vm2482_vm15 = vmand %vm5298_vm7, %vm5325_vm13  ;;  %vm5332_vm7 = vcmask 523264   ;;  %3656 = vmatpush3.bf16.msra.mxu0 %v3958_v58  ;;  %v3960_v63 = vld [vmem:[%s5282_s10 + $0x20] sm:$0xff]   ;;  %v3961_v0 = vld [vmem:[%s5282_s10 + $0x28] sm:$0xff]  }
 0x68e   :  { %2463 = vst [vmem:[#allocation4] sm:$0x3] %v2462_v1  ;;  %v2476_v61 = vrot.slane %v2475_v56, 7  ;;  %vm2483_vm2 = vmor %vm2482_vm15, %vm2480_vm6  ;;  %v2542_v23 = vpop.permute.xlu1 %2541  ;;  %vm5330_vm6 = vcmask 1040896   ;;  %vm5331_vm15 = vsmask.f32 1280  ;;  %3657 = vmatprep.subr.bf16.mxu0 %v4000_v21 }
 0x68f   :  { %vm2513_vm13 = vmand %vm5330_vm6, %vm5329_vm9  ;;  %v2543_v9 = vrot.slane %v2542_v23, 7  ;;  %vm5336_vm6 = vcmask 916480   ;;  %v3962_v1 = vld [vmem:[%s5282_s10 + $0x30] sm:$0xff]  }
 0x690   :  { %v2477_v6 = vsel %vm5297_vm1, %v2476_v61, %v2475_v56  ;;  %vm2560_vm9 = vmand %vm5333_vm14, %vm2532_vm11  ;;  %vm5338_vm14 = vcmask 523264   ;;  %v3969_v56 = vld [vmem:[%s5284_s12 + $0x28] sm:$0xff]  }
 0x691   :  { %v2508_v25 = vpop.permute.xlu0 %2507  ;;  %v2544_v15 = vsel %vm1247_vm0, %v2543_v9, %v2542_v23  ;;  %vm5335_vm0 = vcmask 517121   ;;  %3658 = vmatpush3.bf16.msra.mxu0 %v3959_v59  ;;  %v3481_v23 = vld [vmem:[%s5281_s9] ss:$0 sm:$0xff] }
 0x692   :  { %v2509_v18 = vrot.slane %v2508_v25, 7  ;;  %v2558_v28 = vpop.permute.xlu1 %2557  ;;  %3659 = vmatprep.subr.bf16.mxu0 %v4000_v21 }
 0x694   :  { %v2510_v60 = vsel %vm5332_vm7, %v2509_v18, %v2508_v25 }
 0x695   :  { %v2470_v13 = vld [vmem:[#allocation4 + $0x1] sm:$0x1]  ;;  %v2534_v11 = vld [vmem:[#allocation4] sm:$0x1]  ;;  %v2588_v51 = vpop.permute.xlu0 %2587  ;;  %3660 = vmatpush3.bf16.msra.mxu0 %v3960_v63 }
 0x696   :  { %v2471_v17 = vsel %vm2469_vm12, %v2466_v2, %v2470_v13  ;;  %v2535_v53 = vsel %vm2533_vm8, %v2529_v45, %v2534_v11  ;;  %vm5113_vm12 = vmand %vm5326_vm3, %vm2532_vm11  ;;  %vm2514_vm8 = vcmask 123905   ;;  %v2589_v50 = vrot.slane %v2588_v51, 7  ;;  %v2610_v19 = vpop.permute.xlu1 %2609  ;;  %3661 = vmatprep.subr.bf16.mxu0 %v4000_v21  ;;  %v3963_v45 = vld [vmem:[%s5282_s10 + $0x38] sm:$0xff]   ;;  %v3964_v2 = vld [vmem:[%s5284_s12] sm:$0xff]  }
 0x697   :  { %2472 = vst [vmem:[#allocation4 + $0x1] sm:$0x1] %v2471_v17  ;;  %2536 = vst [vmem:[#allocation4] sm:$0x1] %v2535_v53  ;;  %v2611_v32 = vrot.slane %v2610_v19, 7  ;;  %v3965_v13 = vld [vmem:[%s5284_s12 + $0x8] sm:$0xff]  }
 0x698   :  { %vm2515_vm1 = vmand %vm2514_vm8, %vm5331_vm15  ;;  %v2590_v8 = vsel %vm5336_vm6, %v2589_v50, %v2588_v51  ;;  %v3966_v11 = vld [vmem:[%s5284_s12 + $0x10] sm:$0xff]   ;;  %v3967_v17 = vld [vmem:[%s5284_s12 + $0x18] sm:$0xff]  }
 0x699   :  { %vm2549_vm3 = vmor %vm2548_vm10, %vm5113_vm12  ;;  %v2612_v33 = vsel %vm5338_vm14, %v2611_v32, %v2610_v19  ;;  %3662 = vmatpush3.bf16.msra.mxu0 %v3961_v0  ;;  %v3968_v53 = vld [vmem:[%s5284_s12 + $0x20] sm:$0xff]  }
 0x69a   :  { %vm2593_vm10 = vmand %vm5335_vm0, %vm2547_vm4  ;;  %3663 = vmatprep.subr.bf16.mxu0 %v4000_v21 }
 0x69d   :  { %3664 = vmatpush3.bf16.msra.mxu0 %v3962_v1 }
 0x69e   :  { %v2484_v14 = vld [vmem:[#allocation4 + $0x1] sm:$0x3]  ;;  %3665 = vmatprep.subr.bf16.mxu0 %v4000_v21 }
 0x69f   :  { %v2485_v7 = vsel %vm2483_vm2, %v2477_v6, %v2484_v14  ;;  %vm2516_vm2 = vmor %vm2515_vm1, %vm2513_vm13  ;;  %vm5334_vm1 = vcmask 1041280   ;;  %vm5337_vm13 = vcmask 1040896  }
 0x6a0   :  { %2486 = vst [vmem:[#allocation4 + $0x1] sm:$0x3] %v2485_v7  ;;  %vm2592_vm12 = vmand %vm5334_vm1, %vm2532_vm11 }
 0x6a1   :  { %vm2594_vm7 = vmor %vm2593_vm10, %vm2592_vm12  ;;  %3666 = vmatpush3.bf16.msra.mxu0 %v3963_v45 }
 0x6a2   :  { %vm2614_vm15 = vmand %vm5337_vm13, %vm2532_vm11 }
 0x6a7   :  { %v2550_v35 = vld [vmem:[#allocation4] sm:$0x3]  ;;  %v2517_v5 = vld [vmem:[#allocation4 + $0x2] sm:$0x3] }
 0x6a8   :  { %v2551_v12 = vsel %vm2549_vm3, %v2544_v15, %v2550_v35  ;;  %v2518_v29 = vsel %vm2516_vm2, %v2510_v60, %v2517_v5  ;;  %vm2615_vm3 = vmand %vm2514_vm8, %vm2547_vm4 }
 0x6a9   :  { %2552 = vst [vmem:[#allocation4] sm:$0x3] %v2551_v12  ;;  %2519 = vst [vmem:[#allocation4 + $0x2] sm:$0x3] %v2518_v29 }
 0x6aa   :  { %vm2616_vm2 = vmor %vm2615_vm3, %vm2614_vm15 }
 0x6b0   :  { %v2561_v48 = vld [vmem:[#allocation4 + $0x1] sm:$0x1] }
 0x6b1   :  { %v2562_v30 = vsel %vm2560_vm9, %v2558_v28, %v2561_v48  ;;  %v3970_v48 = vld [vmem:[%s5284_s12 + $0x30] sm:$0xff]   ;;  %v3971_v28 = vld [vmem:[%s5284_s12 + $0x38] sm:$0xff]  }
 0x6b2   :  { %2563 = vst [vmem:[#allocation4 + $0x1] sm:$0x1] %v2562_v30  ;;  %v3515_v30 = vld [vmem:[%s5283_s11] ss:$0 sm:$0xff]  ;;  %s3972_s11 = scalar_lea.vmem %s3227_s29, 32 }
 0x6b3   :  { %p3973_p0 = scmp.ne.s32.totalorder %s3227_s29, %s3972_s11  ;;  %p3978_p2 = scmp.lt.s32.totalorder %s3972_s11, %s3972_s11 }
 0x6b5   :  { %p3979_p3 = por %p3978_p2, %p3977_p1 }
 0x6b7   :  { %p3980_p4 = pnand %p3979_p3, %p3973_p0 }
 0x6b9   :  { %v2595_v20 = vld [vmem:[#allocation4 + $0x1] sm:$0x3] }
 0x6ba   :  { %v2596_v16 = vsel %vm2594_vm7, %v2590_v8, %v2595_v20 }
 0x6bb   :  { %2597 = vst [vmem:[#allocation4 + $0x1] sm:$0x3] %v2596_v16 }
 0x6c2   :  { %v2617_v27 = vld [vmem:[#allocation4 + $0x2] sm:$0x3] }
 0x6c3   :  { %v2618_v31 = vsel %vm2616_vm2, %v2612_v33, %v2617_v27 }
 0x6c4   :  { %2619 = vst [vmem:[#allocation4 + $0x2] sm:$0x3] %v2618_v31 }
 0x6cb   :  { %v3482_v34 = vld.sshfl [vmem:[#allocation4] sm:$0x33 pattern:$0x75316420] }
 0x6cc   :  { %v2700_v36 = vcombine.high %v3482_v34, %v3482_v34  ;;  %v2707_v62 = vrot.slane %v3482_v34, %v5019_v26 }
 0x6ce   :  { %v2714_v38 = vrot.slane %v2700_v36, %v5019_v26  ;;  %v3945_v26 = vld [vmem:[%s5280_s8 + $0x90] sm:$0xff]   ;;  %v2715_v24 = vcombine.high %v2707_v62, %v2707_v62 }
 0x6d0   :  { %2945 = vmatprep.mubr.bf16.mxu1 %v2714_v38  ;;  %v2716_v40 = vcombine.high %v2714_v38, %v2714_v38 }
 0x6d1   :  { %2946 = vmatmul.mubr.bf16.vlgmr.msra.gmra.mrb[48].mxu1 %v2707_v62 }
 0x6d2   :  { %3580 = vmatpush3.bf16.msra.mxu1 %v3941_v39  ;;  %2985 = vmatprep.mubr.bf16.mxu1 %v2716_v40 }
 0x6d3   :  { %3581 = vmatprep.subr.bf16.mxu1 %v3942_v37 }
 0x6d6   :  { %3582 = vmatpush3.bf16.msra.mxu1 %v3943_v41 }
 0x6d7   :  { %3583 = vmatprep.subr.bf16.mxu1 %v3944_v44 }
 0x6da   :  { %3584 = vmatpush3.bf16.msra.mxu1 %v3945_v26 }
 0x6db   :  { %3585 = vmatprep.subr.bf16.mxu1 %v3946_v42 }
 0x6de   :  { %3586 = vmatpush3.bf16.msra.mxu1 %v3947_v43 }
 0x6df   :  { %3587 = vmatprep.subr.bf16.mxu1 %v3948_v47 }
 0x6e2   :  { %3588 = vmatpush3.bf16.msra.mxu1 %v3949_v54 }
 0x6e3   :  { %3589 = vmatprep.subr.bf16.mxu1 %v3950_v3 }
 0x6e6   :  { %3590 = vmatpush3.bf16.msra.mxu1 %v3951_v4 }
 0x6e7   :  { %3591 = vmatprep.subr.bf16.mxu1 %v3952_v10 }
 0x6ea   :  { %3592 = vmatpush3.bf16.msra.mxu1 %v3953_v22 }
 0x6eb   :  { %3593 = vmatprep.subr.bf16.mxu1 %v3954_v49 }
 0x6ee   :  { %3594 = vmatpush3.bf16.msra.mxu1 %v3955_v55 }
 0x6ef   :  { %3671 = vmatprep.subr.bf16.mxu1 %v4000_v21 }
 0x6f1   :  { %2986 = vmatmul.mubr.bf16.vlgmr.msra.gmra.mrb[52].mxu1 %v2715_v24 }
 0x6f2   :  { %3687 = vmatprep.mubr.msk.bf16.mxu1 %vm5313_vm5, %v4000_v21  ;;  %3672 = vmatpush3.bf16.msra.mxu1 %v3964_v2 }
 0x6f3   :  { %3673 = vmatprep.subr.bf16.mxu1 %v4000_v21 }
 0x6f6   :  { %3674 = vmatpush3.bf16.msra.mxu1 %v3965_v13 }
 0x6f7   :  { %3675 = vmatprep.subr.bf16.mxu1 %v4000_v21 }
 0x6fa   :  { %3676 = vmatpush3.bf16.msra.mxu1 %v3966_v11 }
 0x6fb   :  { %3677 = vmatprep.subr.bf16.mxu1 %v4000_v21 }
 0x6fe   :  { %3678 = vmatpush3.bf16.msra.mxu1 %v3967_v17 }
 0x6ff   :  { %3679 = vmatprep.subr.bf16.mxu1 %v4000_v21 }
 0x702   :  { %3680 = vmatpush3.bf16.msra.mxu1 %v3968_v53 }
 0x703   :  { %3681 = vmatprep.subr.bf16.mxu1 %v4000_v21 }
 0x706   :  { %3682 = vmatpush3.bf16.msra.mxu1 %v3969_v56 }
 0x707   :  { %3683 = vmatprep.subr.bf16.mxu1 %v4000_v21 }
 0x70a   :  { %3684 = vmatpush3.bf16.msra.mxu1 %v3970_v48 }
 0x70b   :  { %3685 = vmatprep.subr.bf16.mxu1 %v4000_v21  ;;  %v3524_v21 = vld [vmem:[%s5285_s13] ss:$0 sm:$0xff] }
 0x70e   :  { %3686 = vmatpush3.bf16.msra.mxu1 %v3971_v28 }
 0x7a4   :  { %v3573_v61 = vpop.f32.mrb[48].mxu1 }
 0x7a5   :  { %v3574_v6 = vpop.f32.mrb[49].mxu1 }
 0x7a6   :  { %v3575_v14 = vadd.f32 %v3574_v6, %v3573_v61  ;;  %v3576_v7 = vpop.f32.mrb[50].mxu1 }
 0x7a7   :  { %v3577_v52 = vpop.f32.mrb[51].mxu1 }
 0x7a8   :  { %v2948_v18 = vadd.f32 %v3575_v14, %v3481_v23 }
 0x7c4   :  { %v3595_v25 = vpop.f32.mrb[52].mxu1 }
 0x7c5   :  { %v3596_v9 = vpop.f32.mrb[53].mxu1 }
 0x7c6   :  { %v3597_v35 = vadd.f32 %v3596_v9, %v3595_v25  ;;  %v3598_v15 = vpop.f32.mrb[54].mxu1 }
 0x7c7   :  { %v3599_v5 = vpop.f32.mrb[55].mxu1 }
 0x7c8   :  { %v2988_v60 = vadd.f32 %v3597_v35, %v2948_v18 }
 0x7ca   :  { %v2993_v12 = vmax.f32 %v2988_v60, 0.0 }
 0x7cc   :  { %v2994_v29 = vpack.c.bf16 %v2993_v12, %v2993_v12 }
 0x7ce   :  { %3668 = vmatmul.mubr.bf16.vlgmr.msra.gmra.mrb[40].mxu0 %v2994_v29 }
 0x8a1   :  { %v3100_v51 = vpop.f32.mrb[40].mxu0 }
 0x8a2   :  { %v3101_v50 = vadd.f32 %v3515_v30, %v3100_v51  ;;  %v3669_v20 = vpop.f32.mrb[41].mxu0 }
 0x8a3   :  { %v3103_v8 = vpop.f32.mrb[42].mxu0 }
 0x8a4   :  { %v3106_v16 = vmax.f32 %v3101_v50, 0.0  ;;  %v3670_v19 = vpop.f32.mrb[43].mxu0 }
 0x8a6   :  { %v3107_v32 = vpack.c.bf16 %v3106_v16, %v3106_v16 }
 0x8a8   :  { %3688 = vmatmul.mubr.bf16.vlgmr.msra.gmra.mrb[56].mxu1 %v3107_v32 }
 0x97b   :  { %v3213_v33 = vpop.f32.mrb[56].mxu1 }
 0x97c   :  { %v3214_v27 = vadd.f32 %v3524_v21, %v3213_v33  ;;  %v3689_v31 = vpop.f32.mrb[57].mxu1 }
 0x97d   :  { %v3216_v34 = vpop.f32.mrb[58].mxu1 }
 0x97e   :  { %3219 = vst [vmem:[#allocation5] sm:$0x3] %v3214_v27  ;;  %v3690_v36 = vpop.f32.mrb[59].mxu1 }
 0x97f   :  { %3983 = shalt.err (!%p3980_p4)
}
 0x980   :  { %s3984_s13 = scalar_lea.hbm %s5286_s14, 32 }
 0x981   :  { %p3985_p5 = scmp.ne.s32.totalorder %s5286_s14, %s3984_s13  ;;  %p3988_p6 = scmp.lt.u32.totalorder %s3984_s13, %s5286_s14 }
 0x983   :  { %p3990_p7 = pnand %p3988_p6, %p3985_p5 }
 0x985   :  { %3993 = shalt.err (!%p3990_p7)
}
 0x986   :  { %3229 = dma.vmem_to_hbm [thread:$0]  %s3227_s29, 32, %s5286_s14, [#allocation6]  }
 0x987   :  { %3994 = dma.done.wait [#allocation6], 32  }
 0x988   :  { %3995 = vsyncadd [#allocation6], 4294967264 }
 0x989   :  { %3233 = vsyncpa [#allocation6], 1 }

</bundles_post_ra>
